<compile_context>
chip_gen: v7x
topology: tpu7x:2x2x1
jax: 0.10.0
libtpu: 0.0.40
codegen_flags: <defaults>
</compile_context>

<pallas_src>
import functools
import math

import jax
import jax.numpy as jnp
import numpy as np
from jax.experimental import pallas as pl
from jax.experimental.pallas import tpu as pltpu

B, S, D, H = 2, 8, 128, 4          # batch, seq (= max_seq_length), hidden, heads
DH = D // H                        # attention_head_size = 32
NUM_DP = 4
TPAD = 128                         # relation-table columns padded to a full lane tile
FW = 3 * D + TPAD                  # fused projection width: Wq | Wk | Wv | table
EPS = 1e-12                        # layer_norm_eps


def _batches_per_grid_step():
  """v7x has 2 TensorCores -> keep a batch-parallel grid so both engage;
  v5e/v6e are single-TC -> collapse the grid (per-step overhead dominates at
  these toy shapes).  Resolved lazily at call time so AOT/CPU tracing cannot
  silently pick the wrong split; any failure falls back to the collapsed grid,
  which is always correct."""
  try:
    kinds = [d.device_kind.lower() for d in jax.devices()]
  except Exception:
    return B
  if any(("v7" in k) for k in kinds):
    return 1
  return B


def make_kernel(nb):
  hb = H * nb
  inv_sqrt = 1.0 / math.sqrt(DH)

  def kernel(hs_ref, mask_ref, graph_ref,
             wf_ref, bf_ref, embv_ref,
             wo_ref, bo_ref, gamma_ref, beta_ref,
             out_ref):
    """One grid step = `nb` batch elements.

    hs_ref:    [nb*S, D]  f32   rows of the flattened [B*S, D] input
    mask_ref:  [nb, 1, S] f32   additive mask (0 / -1e4) over keys
    graph_ref: [nb, S, S] i32   dependency-relation ids in [0, NUM_DP)
    wf_ref:    [D, FW]    bf16  fused Wq | Wk | Wv | (Wq-folded emb_k table, zero-padded)
    bf_ref:    [1, FW]    f32   fused biases (table bias = bq . emb_k)
    embv_ref:  [NUM_DP, DH] f32
    wo_ref:    [D, D]     bf16;  bo/gamma/beta: [1, D] f32
    out_ref:   [nb*S, D]
    """
    hs = hs_ref[...]                                        # [nb*S, D] f32
    hs_b = hs.astype(jnp.bfloat16)

    # Single fused MXU pass: q | k | v | per-head relation-key table.
    proj = jnp.dot(hs_b, wf_ref[...],
                   preferred_element_type=jnp.float32) + bf_ref[...]   # [nb*S, FW]

    def split_heads(x, w):
      # [nb*S, H*w] -> [H*nb, S, w]   (leading index = h*nb + b)
      parts = [x[:, h * w:(h + 1) * w] for h in range(H)]
      return jnp.stack(parts, axis=0).reshape(hb, S, w)

    q_s = split_heads(proj[:, 0 * D:1 * D], DH).astype(jnp.bfloat16)
    k_s = split_heads(proj[:, 1 * D:2 * D], DH).astype(jnp.bfloat16)
    v_s = split_heads(proj[:, 2 * D:3 * D], DH).astype(jnp.bfloat16)
    t_s = split_heads(proj[:, 3 * D:3 * D + H * NUM_DP], NUM_DP)       # f32

    # scores[hb, i, j] = q_h[b, i] . k_h[b, j]   (one head-batched MXU pass)
    scores = jnp.einsum("bqd,bkd->bqk", q_s, k_s,
                        preferred_element_type=jnp.float32)            # [hb, S, S]

    # One-hot relation masks, hoisted and shared across heads.
    g = graph_ref[...]                                                 # [nb, S, S]
    oh = [jnp.broadcast_to(((g == r).astype(jnp.float32))[None],
                           (H, nb, S, S)).reshape(hb, S, S)
          for r in range(NUM_DP)]

    # relative_matmul_dp: rel_k[hb,i,j] = q_h[i,:] . emb_k[graph[i,j],:]
    #                                   = t_s[hb, i, graph[b,i,j]]
    rel_k = oh[0] * t_s[:, :, 0:1]
    for r in range(1, NUM_DP):
      rel_k = rel_k + oh[r] * t_s[:, :, r:r + 1]

    mask = jnp.broadcast_to(mask_ref[...], (nb, S, S))                 # [nb, S, S]
    mask = jnp.broadcast_to(mask[None], (H, nb, S, S)).reshape(hb, S, S)

    # div_sqrt=True: both score terms divided by sqrt(DH), then additive mask.
    logits = (scores + rel_k) * inv_sqrt + mask

    # One softmax over keys for all heads/batches (dropout p=0 -> identity);
    # denominator reciprocal on the EUP.
    m = jnp.max(logits, axis=-1, keepdims=True)
    e = jnp.exp(logits - m)
    probs = e * pl.reciprocal(jnp.sum(e, axis=-1, keepdims=True), approx=True)

    ctx = jnp.einsum("bqk,bkd->bqd", probs.astype(jnp.bfloat16), v_s,
                     preferred_element_type=jnp.float32)               # [hb, S, DH]

    # relative_matmul_dpv: rel_v[hb,i,:] = sum_j probs[hb,i,j]*emb_v[graph[b,i,j],:]
    #   = mass @ emb_v, with mass[hb,i,r] = sum_j probs*onehot_r (lane reductions).
    mass = jnp.concatenate(
        [jnp.sum(probs * oh[r], axis=-1, keepdims=True) for r in range(NUM_DP)],
        axis=-1)                                                       # [hb, S, NUM_DP]
    rel_v = jnp.dot(mass.reshape(hb * S, NUM_DP), embv_ref[...],
                    preferred_element_type=jnp.float32).reshape(hb, S, DH)

    # Re-assemble a lane-dense [nb*S, D] context in registers (no VMEM scratch,
    # no masked 32-lane stores).
    ctx = (ctx + rel_v).reshape(H, nb * S, DH)
    ctx2d = jnp.concatenate([ctx[h] for h in range(H)], axis=-1)       # [nb*S, D]

    # BertSelfOutput: dense -> (dropout=0) -> residual -> LayerNorm.
    dense = jnp.dot(ctx2d.astype(jnp.bfloat16), wo_ref[...],
                    preferred_element_type=jnp.float32) + bo_ref[...]
    resid = dense + hs
    mu = jnp.mean(resid, axis=-1, keepdims=True)
    var = jnp.mean(jnp.square(resid - mu), axis=-1, keepdims=True)
    normed = (resid - mu) * jax.lax.rsqrt(var + EPS)
    out_ref[...] = (normed * gamma_ref[...] + beta_ref[...]).astype(out_ref.dtype)

  return kernel


@functools.lru_cache(maxsize=None)
def _build_call(nb):
  grid_b = B // nb
  call = pl.pallas_call(
      make_kernel(nb),
      out_shape=jax.ShapeDtypeStruct((B * S, D), jnp.float32),
      grid=(grid_b,),
      in_specs=[
          pl.BlockSpec((nb * S, D), lambda b: (b, 0)),        # hidden_states rows
          pl.BlockSpec((nb, 1, S), lambda b: (b, 0, 0)),      # attention_mask
          pl.BlockSpec((nb, S, S), lambda b: (b, 0, 0)),      # graph ids (int32)
          pl.BlockSpec((D, FW), lambda b: (0, 0)),            # fused Wq|Wk|Wv|table (bf16)
          pl.BlockSpec((1, FW), lambda b: (0, 0)),            # fused bias
          pl.BlockSpec((NUM_DP, DH), lambda b: (0, 0)),       # emb_v
          pl.BlockSpec((D, D), lambda b: (0, 0)),             # Wo (bf16)
          pl.BlockSpec((1, D), lambda b: (0, 0)),             # bo
          pl.BlockSpec((1, D), lambda b: (0, 0)),             # LayerNorm gamma
          pl.BlockSpec((1, D), lambda b: (0, 0)),             # LayerNorm beta
      ],
      out_specs=pl.BlockSpec((nb * S, D), lambda b: (b, 0)),  # lane-dense (D=128)
      compiler_params=pltpu.CompilerParams(
          dimension_semantics=("parallel",)),
      # NOTE: at real BERT sizes (S>=128, D>=768) also tile the key axis, set
      # vmem_limit_bytes, and single-buffer the constant-index weight blocks
      # (pipeline_mode=pl.Buffered(1)) so v7x's 64 MiB VMEM is respected.
  )

  @jax.jit
  def fn(hidden_states, attention_mask, graph,
         wfused, bfused, emb_v, wo, bo, ln_g, ln_b):
    out2d = call(hidden_states.reshape(B * S, D), attention_mask, graph,
                 wfused, bfused, emb_v, wo, bo, ln_g, ln_b)
    return out2d.reshape(B, S, D)

  return fn


def prepare_params(params):
  """One-time fused-weight preparation (hoisted out of the per-call jit path)."""
  wq, wk, wv = params["wq"], params["wk"], params["wv"]
  bq, bk, bv = params["bq"], params["bk"], params["bv"]
  emb_k = params["emb_k"]
  # w_tab[d, h*NUM_DP + r] = sum_c Wq[d, h*DH + c] * emb_k[r, c]
  w_tab = jnp.einsum("dhc,rc->dhr", wq.reshape(D, H, DH),
                     emb_k).reshape(D, H * NUM_DP)
  b_tab = jnp.einsum("hc,rc->hr", bq.reshape(H, DH),
                     emb_k).reshape(1, H * NUM_DP)
  w_tab = jnp.pad(w_tab, ((0, 0), (0, TPAD - H * NUM_DP)))
  b_tab = jnp.pad(b_tab, ((0, 0), (0, TPAD - H * NUM_DP)))
  return {
      "wfused": jnp.concatenate([wq, wk, wv, w_tab], axis=1).astype(jnp.bfloat16),
      "bfused": jnp.concatenate([bq, bk, bv, b_tab], axis=1).astype(jnp.float32),
      "emb_v": params["emb_v"].astype(jnp.float32),
      "wo": params["wo"].astype(jnp.bfloat16),
      "bo": params["bo"],
      "ln_g": params["ln_g"],
      "ln_b": params["ln_b"],
  }


def bert_graph_attention(hidden_states, attention_mask, graph, prepared):
  nb = _batches_per_grid_step()
  if B % nb != 0:
    nb = B
  fn = _build_call(nb)
  return fn(hidden_states, attention_mask, graph,
            prepared["wfused"], prepared["bfused"], prepared["emb_v"],
            prepared["wo"], prepared["bo"], prepared["ln_g"], prepared["ln_b"])


def reference(hidden_states, attention_mask, graph, params):
  """Pure-JAX mirror of the PyTorch forward, with the same bf16-in / f32-acc
  matmul policy as the kernel (softmax / LayerNorm in f32)."""
  bf16 = jnp.bfloat16

  def mm(a, w):
    return jnp.dot(a.astype(bf16), w.astype(bf16),
                   preferred_element_type=jnp.float32)

  q = mm(hidden_states, params["wq"]) + params["bq"][0]
  k = mm(hidden_states, params["wk"]) + params["bk"][0]
  v = mm(hidden_states, params["wv"]) + params["bv"][0]
  qh = q.reshape(B, S, H, DH).transpose(0, 2, 1, 3)
  kh = k.reshape(B, S, H, DH).transpose(0, 2, 1, 3)
  vh = v.reshape(B, S, H, DH).transpose(0, 2, 1, 3)

  dpk = params["emb_k"][graph]              # [B, S, S, DH]
  dpv = params["emb_v"][graph]

  scores = jnp.einsum("bhid,bhjd->bhij", qh.astype(bf16), kh.astype(bf16),
                      preferred_element_type=jnp.float32)
  rel = jnp.einsum("bhid,bijd->bhij", qh.astype(bf16), dpk.astype(bf16),
                   preferred_element_type=jnp.float32)
  scores = (scores + rel) / math.sqrt(DH) + attention_mask[:, None, :, :]
  probs = jax.nn.softmax(scores, axis=-1)

  ctx = jnp.einsum("bhij,bhjd->bhid", probs.astype(bf16), vh.astype(bf16),
                   preferred_element_type=jnp.float32)
  relv = jnp.einsum("bhij,bijd->bhid", probs, dpv)
  ctx = (ctx + relv).transpose(0, 2, 1, 3).reshape(B, S, D)

  dense = mm(ctx, params["wo"]) + params["bo"][0]
  resid = dense + hidden_states
  mu = resid.mean(-1, keepdims=True)
  var = ((resid - mu) ** 2).mean(-1, keepdims=True)
  return (resid - mu) / jnp.sqrt(var + EPS) * params["ln_g"][0] + params["ln_b"][0]


def init_params(key):
  ks = jax.random.split(key, 10)
  scale = 0.02
  return {
      "wq": scale * jax.random.normal(ks[0], (D, D), jnp.float32),
      "bq": scale * jax.random.normal(ks[1], (1, D), jnp.float32),
      "wk": scale * jax.random.normal(ks[2], (D, D), jnp.float32),
      "bk": scale * jax.random.normal(ks[3], (1, D), jnp.float32),
      "wv": scale * jax.random.normal(ks[4], (D, D), jnp.float32),
      "bv": scale * jax.random.normal(ks[5], (1, D), jnp.float32),
      "wo": scale * jax.random.normal(ks[6], (D, D), jnp.float32),
      "bo": scale * jax.random.normal(ks[7], (1, D), jnp.float32),
      "emb_k": jax.random.normal(ks[8], (NUM_DP, DH), jnp.float32),  # dp_relation_k
      "emb_v": jax.random.normal(ks[9], (NUM_DP, DH), jnp.float32),  # dp_relation_v
      "ln_g": jnp.ones((1, D), jnp.float32),
      "ln_b": jnp.zeros((1, D), jnp.float32),
  }


if __name__ == "__main__":
  key = jax.random.PRNGKey(0)
  k_hs, k_g, k_p = jax.random.split(key, 3)

  hidden_states = jax.random.normal(k_hs, (B, S, D), jnp.float32)
  graph = jax.random.randint(k_g, (B, S, S), 0, NUM_DP, jnp.int32)

  # additive padding mask: batch 0 full length, batch 1 has last 2 tokens padded
  lengths = jnp.array([S, S - 2])
  pos = jnp.arange(S)[None, :]
  attention_mask = jnp.where(pos < lengths[:, None], 0.0, -1e4).astype(jnp.float32)
  attention_mask = attention_mask[:, None, :]          # [B, 1, S]

  params = init_params(k_p)
  prepared = jax.tree_util.tree_map(jax.block_until_ready, prepare_params(params))

  out = bert_graph_attention(hidden_states, attention_mask, graph, prepared)
  out = jax.block_until_ready(out)

  ref = reference(hidden_states, attention_mask, graph, params)
  np.testing.assert_allclose(np.asarray(out), np.asarray(ref), rtol=2e-3, atol=2e-3)

  # TODO(synk): attention/hidden dropout treated as identity (p=0, eval mode).
  print("KERNEL_OK")
</pallas_src>

<mosaic_0001>
module attributes {stable_mosaic.version = 11 : i64} {
  func.func @kernel(%arg0: i32, %arg1: memref<16x128xf32, #tpu.memory_space<vmem>>, %arg2: memref<2x1x8xf32, #tpu.memory_space<vmem>>, %arg3: memref<2x8x8xi32, #tpu.memory_space<vmem>>, %arg4: memref<128x512xbf16, #tpu.memory_space<vmem>>, %arg5: memref<1x512xf32, #tpu.memory_space<vmem>>, %arg6: memref<4x32xf32, #tpu.memory_space<vmem>>, %arg7: memref<128x128xbf16, #tpu.memory_space<vmem>>, %arg8: memref<1x128xf32, #tpu.memory_space<vmem>>, %arg9: memref<1x128xf32, #tpu.memory_space<vmem>>, %arg10: memref<1x128xf32, #tpu.memory_space<vmem>>, %arg11: memref<16x128xf32, #tpu.memory_space<vmem>>) attributes {dimension_semantics = [#tpu.dimension_semantics<parallel>], iteration_bounds = array<i64: 1>, scalar_prefetch = 0 : i64, scratch_operands = 0 : i64, tpu.core_type = #tpu.core_type<tc>, window_params = [{transform_indices = @transform_0, window_bounds = array<i64: 16, 128>}, {transform_indices = @transform_1, window_bounds = array<i64: 2, 1, 8>}, {transform_indices = @transform_2, window_bounds = array<i64: 2, 8, 8>}, {pipeline_mode = #tpu.pipeline_mode<synchronous>, transform_indices = @transform_3, window_bounds = array<i64: 128, 512>}, {pipeline_mode = #tpu.pipeline_mode<synchronous>, transform_indices = @transform_4, window_bounds = array<i64: 1, 512>}, {pipeline_mode = #tpu.pipeline_mode<synchronous>, transform_indices = @transform_5, window_bounds = array<i64: 4, 32>}, {pipeline_mode = #tpu.pipeline_mode<synchronous>, transform_indices = @transform_6, window_bounds = array<i64: 128, 128>}, {pipeline_mode = #tpu.pipeline_mode<synchronous>, transform_indices = @transform_7, window_bounds = array<i64: 1, 128>}, {pipeline_mode = #tpu.pipeline_mode<synchronous>, transform_indices = @transform_8, window_bounds = array<i64: 1, 128>}, {pipeline_mode = #tpu.pipeline_mode<synchronous>, transform_indices = @transform_9, window_bounds = array<i64: 1, 128>}, {transform_indices = @transform_10, window_bounds = array<i64: 16, 128>}]} {
    %c0 = arith.constant 0 : index
    %c0_0 = arith.constant 0 : index
    %0 = vector.load %arg1[%c0, %c0_0] : memref<16x128xf32, #tpu.memory_space<vmem>>, vector<16x128xf32>
    %1 = arith.truncf %0 : vector<16x128xf32> to vector<16x128xbf16>
    %c0_1 = arith.constant 0 : index
    %c0_2 = arith.constant 0 : index
    %2 = vector.load %arg4[%c0_1, %c0_2] : memref<128x512xbf16, #tpu.memory_space<vmem>>, vector<128x512xbf16>
    %cst = arith.constant dense<0.000000e+00> : vector<16x512xf32>
    %3 = tpu.matmul %1, %2, %cst {dimension_numbers = #tpu.dot_dimension_numbers<[1], [0], [0], [1], [0, 0, 1, 1], [], []>} : vector<16x128xbf16>, vector<128x512xbf16>, vector<16x512xf32> -> vector<16x512xf32>
    %c0_3 = arith.constant 0 : index
    %c0_4 = arith.constant 0 : index
    %4 = vector.load %arg5[%c0_3, %c0_4] : memref<1x512xf32, #tpu.memory_space<vmem>>, vector<1x512xf32>
    %5 = vector.broadcast %4 : vector<1x512xf32> to vector<16x512xf32>
    %6 = arith.addf %3, %5 : vector<16x512xf32>
    %7 = vector.extract_strided_slice %6 {offsets = [0, 0], sizes = [16, 128], strides = [1, 1]} : vector<16x512xf32> to vector<16x128xf32>
    %8 = vector.extract_strided_slice %7 {offsets = [0, 0], sizes = [16, 32], strides = [1, 1]} : vector<16x128xf32> to vector<16x32xf32>
    %9 = vector.extract_strided_slice %7 {offsets = [0, 32], sizes = [16, 32], strides = [1, 1]} : vector<16x128xf32> to vector<16x32xf32>
    %10 = vector.extract_strided_slice %7 {offsets = [0, 64], sizes = [16, 32], strides = [1, 1]} : vector<16x128xf32> to vector<16x32xf32>
    %11 = vector.extract_strided_slice %7 {offsets = [0, 96], sizes = [16, 32], strides = [1, 1]} : vector<16x128xf32> to vector<16x32xf32>
    %12 = vector.shape_cast %8 : vector<16x32xf32> to vector<1x16x32xf32>
    %13 = vector.shape_cast %9 : vector<16x32xf32> to vector<1x16x32xf32>
    %14 = vector.shape_cast %10 : vector<16x32xf32> to vector<1x16x32xf32>
    %15 = vector.shape_cast %11 : vector<16x32xf32> to vector<1x16x32xf32>
    %16 = tpu.concatenate %12, %13, %14, %15 in 0 : vector<1x16x32xf32>, vector<1x16x32xf32>, vector<1x16x32xf32>, vector<1x16x32xf32> -> vector<4x16x32xf32>
    %17 = vector.shape_cast %16 : vector<4x16x32xf32> to vector<8x8x32xf32>
    %18 = arith.truncf %17 : vector<8x8x32xf32> to vector<8x8x32xbf16>
    %19 = vector.extract_strided_slice %6 {offsets = [0, 128], sizes = [16, 128], strides = [1, 1]} : vector<16x512xf32> to vector<16x128xf32>
    %20 = vector.extract_strided_slice %19 {offsets = [0, 0], sizes = [16, 32], strides = [1, 1]} : vector<16x128xf32> to vector<16x32xf32>
    %21 = vector.extract_strided_slice %19 {offsets = [0, 32], sizes = [16, 32], strides = [1, 1]} : vector<16x128xf32> to vector<16x32xf32>
    %22 = vector.extract_strided_slice %19 {offsets = [0, 64], sizes = [16, 32], strides = [1, 1]} : vector<16x128xf32> to vector<16x32xf32>
    %23 = vector.extract_strided_slice %19 {offsets = [0, 96], sizes = [16, 32], strides = [1, 1]} : vector<16x128xf32> to vector<16x32xf32>
    %24 = vector.shape_cast %20 : vector<16x32xf32> to vector<1x16x32xf32>
    %25 = vector.shape_cast %21 : vector<16x32xf32> to vector<1x16x32xf32>
    %26 = vector.shape_cast %22 : vector<16x32xf32> to vector<1x16x32xf32>
    %27 = vector.shape_cast %23 : vector<16x32xf32> to vector<1x16x32xf32>
    %28 = tpu.concatenate %24, %25, %26, %27 in 0 : vector<1x16x32xf32>, vector<1x16x32xf32>, vector<1x16x32xf32>, vector<1x16x32xf32> -> vector<4x16x32xf32>
    %29 = vector.shape_cast %28 : vector<4x16x32xf32> to vector<8x8x32xf32>
    %30 = arith.truncf %29 : vector<8x8x32xf32> to vector<8x8x32xbf16>
    %31 = vector.extract_strided_slice %6 {offsets = [0, 256], sizes = [16, 128], strides = [1, 1]} : vector<16x512xf32> to vector<16x128xf32>
    %32 = vector.extract_strided_slice %31 {offsets = [0, 0], sizes = [16, 32], strides = [1, 1]} : vector<16x128xf32> to vector<16x32xf32>
    %33 = vector.extract_strided_slice %31 {offsets = [0, 32], sizes = [16, 32], strides = [1, 1]} : vector<16x128xf32> to vector<16x32xf32>
    %34 = vector.extract_strided_slice %31 {offsets = [0, 64], sizes = [16, 32], strides = [1, 1]} : vector<16x128xf32> to vector<16x32xf32>
    %35 = vector.extract_strided_slice %31 {offsets = [0, 96], sizes = [16, 32], strides = [1, 1]} : vector<16x128xf32> to vector<16x32xf32>
    %36 = vector.shape_cast %32 : vector<16x32xf32> to vector<1x16x32xf32>
    %37 = vector.shape_cast %33 : vector<16x32xf32> to vector<1x16x32xf32>
    %38 = vector.shape_cast %34 : vector<16x32xf32> to vector<1x16x32xf32>
    %39 = vector.shape_cast %35 : vector<16x32xf32> to vector<1x16x32xf32>
    %40 = tpu.concatenate %36, %37, %38, %39 in 0 : vector<1x16x32xf32>, vector<1x16x32xf32>, vector<1x16x32xf32>, vector<1x16x32xf32> -> vector<4x16x32xf32>
    %41 = vector.shape_cast %40 : vector<4x16x32xf32> to vector<8x8x32xf32>
    %42 = arith.truncf %41 : vector<8x8x32xf32> to vector<8x8x32xbf16>
    %43 = vector.extract_strided_slice %6 {offsets = [0, 384], sizes = [16, 16], strides = [1, 1]} : vector<16x512xf32> to vector<16x16xf32>
    %44 = vector.extract_strided_slice %43 {offsets = [0, 0], sizes = [16, 4], strides = [1, 1]} : vector<16x16xf32> to vector<16x4xf32>
    %45 = vector.extract_strided_slice %43 {offsets = [0, 4], sizes = [16, 4], strides = [1, 1]} : vector<16x16xf32> to vector<16x4xf32>
    %46 = vector.extract_strided_slice %43 {offsets = [0, 8], sizes = [16, 4], strides = [1, 1]} : vector<16x16xf32> to vector<16x4xf32>
    %47 = vector.extract_strided_slice %43 {offsets = [0, 12], sizes = [16, 4], strides = [1, 1]} : vector<16x16xf32> to vector<16x4xf32>
    %48 = vector.shape_cast %44 : vector<16x4xf32> to vector<1x16x4xf32>
    %49 = vector.shape_cast %45 : vector<16x4xf32> to vector<1x16x4xf32>
    %50 = vector.shape_cast %46 : vector<16x4xf32> to vector<1x16x4xf32>
    %51 = vector.shape_cast %47 : vector<16x4xf32> to vector<1x16x4xf32>
    %52 = tpu.concatenate %48, %49, %50, %51 in 0 : vector<1x16x4xf32>, vector<1x16x4xf32>, vector<1x16x4xf32>, vector<1x16x4xf32> -> vector<4x16x4xf32>
    %53 = vector.shape_cast %52 : vector<4x16x4xf32> to vector<8x8x4xf32>
    "tpu.trace_start"() <{level = 10 : i32, message = "bqd,bkd->bqk"}> : () -> ()
    %cst_5 = arith.constant dense<0.000000e+00> : vector<8x8x8xf32>
    %54 = tpu.matmul %18, %30, %cst_5 {dimension_numbers = #tpu.dot_dimension_numbers<[2], [2], [1], [1], [0, 0, 0, 1, 1, 1], [0], [0]>} : vector<8x8x32xbf16>, vector<8x8x32xbf16>, vector<8x8x8xf32> -> vector<8x8x8xf32>
    "tpu.trace_stop"() : () -> ()
    %c0_6 = arith.constant 0 : index
    %c0_7 = arith.constant 0 : index
    %c0_8 = arith.constant 0 : index
    %55 = vector.load %arg3[%c0_6, %c0_7, %c0_8] : memref<2x8x8xi32, #tpu.memory_space<vmem>>, vector<2x8x8xi32>
    %c0_i32 = arith.constant 0 : i32
    %56 = vector.broadcast %c0_i32 : i32 to vector<2x8x8xi32>
    %57 = arith.cmpi eq, %55, %56 : vector<2x8x8xi32>
    %58 = arith.extui %57 : vector<2x8x8xi1> to vector<2x8x8xi32>
    %59 = arith.sitofp %58 : vector<2x8x8xi32> to vector<2x8x8xf32>
    %60 = vector.shape_cast %59 : vector<2x8x8xf32> to vector<1x2x8x8xf32>
    %61 = vector.shape_cast %60 : vector<1x2x8x8xf32> to vector<1x2x8x8xf32>
    %62 = vector.broadcast %61 : vector<1x2x8x8xf32> to vector<4x2x8x8xf32>
    %63 = vector.shape_cast %62 : vector<4x2x8x8xf32> to vector<8x8x8xf32>
    %c1_i32 = arith.constant 1 : i32
    %64 = vector.broadcast %c1_i32 : i32 to vector<2x8x8xi32>
    %65 = arith.cmpi eq, %55, %64 : vector<2x8x8xi32>
    %66 = arith.extui %65 : vector<2x8x8xi1> to vector<2x8x8xi32>
    %67 = arith.sitofp %66 : vector<2x8x8xi32> to vector<2x8x8xf32>
    %68 = vector.shape_cast %67 : vector<2x8x8xf32> to vector<1x2x8x8xf32>
    %69 = vector.shape_cast %68 : vector<1x2x8x8xf32> to vector<1x2x8x8xf32>
    %70 = vector.broadcast %69 : vector<1x2x8x8xf32> to vector<4x2x8x8xf32>
    %71 = vector.shape_cast %70 : vector<4x2x8x8xf32> to vector<8x8x8xf32>
    %c2_i32 = arith.constant 2 : i32
    %72 = vector.broadcast %c2_i32 : i32 to vector<2x8x8xi32>
    %73 = arith.cmpi eq, %55, %72 : vector<2x8x8xi32>
    %74 = arith.extui %73 : vector<2x8x8xi1> to vector<2x8x8xi32>
    %75 = arith.sitofp %74 : vector<2x8x8xi32> to vector<2x8x8xf32>
    %76 = vector.shape_cast %75 : vector<2x8x8xf32> to vector<1x2x8x8xf32>
    %77 = vector.shape_cast %76 : vector<1x2x8x8xf32> to vector<1x2x8x8xf32>
    %78 = vector.broadcast %77 : vector<1x2x8x8xf32> to vector<4x2x8x8xf32>
    %79 = vector.shape_cast %78 : vector<4x2x8x8xf32> to vector<8x8x8xf32>
    %c3_i32 = arith.constant 3 : i32
    %80 = vector.broadcast %c3_i32 : i32 to vector<2x8x8xi32>
    %81 = arith.cmpi eq, %55, %80 : vector<2x8x8xi32>
    %82 = arith.extui %81 : vector<2x8x8xi1> to vector<2x8x8xi32>
    %83 = arith.sitofp %82 : vector<2x8x8xi32> to vector<2x8x8xf32>
    %84 = vector.shape_cast %83 : vector<2x8x8xf32> to vector<1x2x8x8xf32>
    %85 = vector.shape_cast %84 : vector<1x2x8x8xf32> to vector<1x2x8x8xf32>
    %86 = vector.broadcast %85 : vector<1x2x8x8xf32> to vector<4x2x8x8xf32>
    %87 = vector.shape_cast %86 : vector<4x2x8x8xf32> to vector<8x8x8xf32>
    %88 = vector.extract_strided_slice %53 {offsets = [0, 0, 0], sizes = [8, 8, 1], strides = [1, 1, 1]} : vector<8x8x4xf32> to vector<8x8x1xf32>
    %89 = vector.broadcast %88 : vector<8x8x1xf32> to vector<8x8x8xf32>
    %90 = arith.mulf %63, %89 : vector<8x8x8xf32>
    %91 = vector.extract_strided_slice %53 {offsets = [0, 0, 1], sizes = [8, 8, 1], strides = [1, 1, 1]} : vector<8x8x4xf32> to vector<8x8x1xf32>
    %92 = vector.broadcast %91 : vector<8x8x1xf32> to vector<8x8x8xf32>
    %93 = arith.mulf %71, %92 : vector<8x8x8xf32>
    %94 = arith.addf %90, %93 : vector<8x8x8xf32>
    %95 = vector.extract_strided_slice %53 {offsets = [0, 0, 2], sizes = [8, 8, 1], strides = [1, 1, 1]} : vector<8x8x4xf32> to vector<8x8x1xf32>
    %96 = vector.broadcast %95 : vector<8x8x1xf32> to vector<8x8x8xf32>
    %97 = arith.mulf %79, %96 : vector<8x8x8xf32>
    %98 = arith.addf %94, %97 : vector<8x8x8xf32>
    %99 = vector.extract_strided_slice %53 {offsets = [0, 0, 3], sizes = [8, 8, 1], strides = [1, 1, 1]} : vector<8x8x4xf32> to vector<8x8x1xf32>
    %100 = vector.broadcast %99 : vector<8x8x1xf32> to vector<8x8x8xf32>
    %101 = arith.mulf %87, %100 : vector<8x8x8xf32>
    %102 = arith.addf %98, %101 : vector<8x8x8xf32>
    %c0_9 = arith.constant 0 : index
    %c0_10 = arith.constant 0 : index
    %c0_11 = arith.constant 0 : index
    %103 = vector.load %arg2[%c0_9, %c0_10, %c0_11] : memref<2x1x8xf32, #tpu.memory_space<vmem>>, vector<2x1x8xf32>
    %104 = vector.shape_cast %103 : vector<2x1x8xf32> to vector<2x1x8xf32>
    %105 = vector.broadcast %104 : vector<2x1x8xf32> to vector<2x8x8xf32>
    %106 = vector.shape_cast %105 : vector<2x8x8xf32> to vector<1x2x8x8xf32>
    %107 = vector.shape_cast %106 : vector<1x2x8x8xf32> to vector<1x2x8x8xf32>
    %108 = vector.broadcast %107 : vector<1x2x8x8xf32> to vector<4x2x8x8xf32>
    %109 = vector.shape_cast %108 : vector<4x2x8x8xf32> to vector<8x8x8xf32>
    %110 = arith.addf %54, %102 : vector<8x8x8xf32>
    %cst_12 = arith.constant 0.176776692 : f32
    %111 = vector.broadcast %cst_12 : f32 to vector<8x8x8xf32>
    %112 = arith.mulf %110, %111 : vector<8x8x8xf32>
    %113 = arith.addf %112, %109 : vector<8x8x8xf32>
    %cst_13 = arith.constant dense<0xFF800000> : vector<8x8xf32>
    %114 = vector.multi_reduction <maximumf>, %113, %cst_13 [2] : vector<8x8x8xf32> to vector<8x8xf32>
    %115 = vector.shape_cast %114 : vector<8x8xf32> to vector<8x8x1xf32>
    %116 = vector.broadcast %115 : vector<8x8x1xf32> to vector<8x8x8xf32>
    %117 = arith.subf %113, %116 : vector<8x8x8xf32>
    %118 = math.exp %117 : vector<8x8x8xf32>
    %cst_14 = arith.constant dense<0.000000e+00> : vector<8x8xf32>
    %119 = vector.multi_reduction <add>, %118, %cst_14 [2] : vector<8x8x8xf32> to vector<8x8xf32>
    %120 = vector.shape_cast %119 : vector<8x8xf32> to vector<8x8x1xf32>
    %121 = tpu.reciprocal %120 {approx = true} : vector<8x8x1xf32> -> vector<8x8x1xf32>
    %122 = vector.broadcast %121 : vector<8x8x1xf32> to vector<8x8x8xf32>
    %123 = arith.mulf %118, %122 : vector<8x8x8xf32>
    %124 = arith.truncf %123 : vector<8x8x8xf32> to vector<8x8x8xbf16>
    "tpu.trace_start"() <{level = 10 : i32, message = "bqk,bkd->bqd"}> : () -> ()
    %cst_15 = arith.constant dense<0.000000e+00> : vector<8x8x32xf32>
    %125 = tpu.matmul %124, %42, %cst_15 {dimension_numbers = #tpu.dot_dimension_numbers<[2], [1], [1], [2], [0, 0, 0, 1, 1, 2], [0], [0]>} : vector<8x8x8xbf16>, vector<8x8x32xbf16>, vector<8x8x32xf32> -> vector<8x8x32xf32>
    "tpu.trace_stop"() : () -> ()
    %126 = arith.mulf %123, %63 : vector<8x8x8xf32>
    %cst_16 = arith.constant dense<0.000000e+00> : vector<8x8xf32>
    %127 = vector.multi_reduction <add>, %126, %cst_16 [2] : vector<8x8x8xf32> to vector<8x8xf32>
    %128 = vector.shape_cast %127 : vector<8x8xf32> to vector<8x8x1xf32>
    %129 = arith.mulf %123, %71 : vector<8x8x8xf32>
    %cst_17 = arith.constant dense<0.000000e+00> : vector<8x8xf32>
    %130 = vector.multi_reduction <add>, %129, %cst_17 [2] : vector<8x8x8xf32> to vector<8x8xf32>
    %131 = vector.shape_cast %130 : vector<8x8xf32> to vector<8x8x1xf32>
    %132 = arith.mulf %123, %79 : vector<8x8x8xf32>
    %cst_18 = arith.constant dense<0.000000e+00> : vector<8x8xf32>
    %133 = vector.multi_reduction <add>, %132, %cst_18 [2] : vector<8x8x8xf32> to vector<8x8xf32>
    %134 = vector.shape_cast %133 : vector<8x8xf32> to vector<8x8x1xf32>
    %135 = arith.mulf %123, %87 : vector<8x8x8xf32>
    %cst_19 = arith.constant dense<0.000000e+00> : vector<8x8xf32>
    %136 = vector.multi_reduction <add>, %135, %cst_19 [2] : vector<8x8x8xf32> to vector<8x8xf32>
    %137 = vector.shape_cast %136 : vector<8x8xf32> to vector<8x8x1xf32>
    %138 = tpu.concatenate %128, %131, %134, %137 in 2 : vector<8x8x1xf32>, vector<8x8x1xf32>, vector<8x8x1xf32>, vector<8x8x1xf32> -> vector<8x8x4xf32>
    %139 = vector.shape_cast %138 : vector<8x8x4xf32> to vector<64x4xf32>
    %c0_20 = arith.constant 0 : index
    %c0_21 = arith.constant 0 : index
    %140 = vector.load %arg6[%c0_20, %c0_21] : memref<4x32xf32, #tpu.memory_space<vmem>>, vector<4x32xf32>
    %cst_22 = arith.constant dense<0.000000e+00> : vector<64x32xf32>
    %141 = tpu.matmul %139, %140, %cst_22 {dimension_numbers = #tpu.dot_dimension_numbers<[1], [0], [0], [1], [0, 0, 1, 1], [], []>} : vector<64x4xf32>, vector<4x32xf32>, vector<64x32xf32> -> vector<64x32xf32>
    %142 = vector.shape_cast %141 : vector<64x32xf32> to vector<8x8x32xf32>
    %143 = arith.addf %125, %142 : vector<8x8x32xf32>
    %144 = vector.shape_cast %143 : vector<8x8x32xf32> to vector<4x16x32xf32>
    %145 = vector.extract_strided_slice %144 {offsets = [0, 0, 0], sizes = [1, 16, 32], strides = [1, 1, 1]} : vector<4x16x32xf32> to vector<1x16x32xf32>
    %146 = vector.shape_cast %145 : vector<1x16x32xf32> to vector<16x32xf32>
    %147 = vector.extract_strided_slice %144 {offsets = [1, 0, 0], sizes = [1, 16, 32], strides = [1, 1, 1]} : vector<4x16x32xf32> to vector<1x16x32xf32>
    %148 = vector.shape_cast %147 : vector<1x16x32xf32> to vector<16x32xf32>
    %149 = vector.extract_strided_slice %144 {offsets = [2, 0, 0], sizes = [1, 16, 32], strides = [1, 1, 1]} : vector<4x16x32xf32> to vector<1x16x32xf32>
    %150 = vector.shape_cast %149 : vector<1x16x32xf32> to vector<16x32xf32>
    %151 = vector.extract_strided_slice %144 {offsets = [3, 0, 0], sizes = [1, 16, 32], strides = [1, 1, 1]} : vector<4x16x32xf32> to vector<1x16x32xf32>
    %152 = vector.shape_cast %151 : vector<1x16x32xf32> to vector<16x32xf32>
    %153 = tpu.concatenate %146, %148, %150, %152 in 1 : vector<16x32xf32>, vector<16x32xf32>, vector<16x32xf32>, vector<16x32xf32> -> vector<16x128xf32>
    %154 = arith.truncf %153 : vector<16x128xf32> to vector<16x128xbf16>
    %c0_23 = arith.constant 0 : index
    %c0_24 = arith.constant 0 : index
    %155 = vector.load %arg7[%c0_23, %c0_24] : memref<128x128xbf16, #tpu.memory_space<vmem>>, vector<128x128xbf16>
    %cst_25 = arith.constant dense<0.000000e+00> : vector<16x128xf32>
    %156 = tpu.matmul %154, %155, %cst_25 {dimension_numbers = #tpu.dot_dimension_numbers<[1], [0], [0], [1], [0, 0, 1, 1], [], []>} : vector<16x128xbf16>, vector<128x128xbf16>, vector<16x128xf32> -> vector<16x128xf32>
    %c0_26 = arith.constant 0 : index
    %c0_27 = arith.constant 0 : index
    %157 = vector.load %arg8[%c0_26, %c0_27] : memref<1x128xf32, #tpu.memory_space<vmem>>, vector<1x128xf32>
    %158 = vector.broadcast %157 : vector<1x128xf32> to vector<16x128xf32>
    %159 = arith.addf %156, %158 : vector<16x128xf32>
    %160 = arith.addf %159, %0 : vector<16x128xf32>
    %cst_28 = arith.constant dense<0.000000e+00> : vector<16xf32>
    %161 = vector.multi_reduction <add>, %160, %cst_28 [1] : vector<16x128xf32> to vector<16xf32>
    %162 = vector.shape_cast %161 : vector<16xf32> to vector<16x1xf32>
    %cst_29 = arith.constant 1.280000e+02 : f32
    %163 = vector.broadcast %cst_29 : f32 to vector<16x1xf32>
    %164 = arith.divf %162, %163 : vector<16x1xf32>
    %165 = vector.broadcast %164 : vector<16x1xf32> to vector<16x128xf32>
    %166 = arith.subf %160, %165 : vector<16x128xf32>
    %167 = arith.mulf %166, %166 : vector<16x128xf32>
    %cst_30 = arith.constant dense<0.000000e+00> : vector<16xf32>
    %168 = vector.multi_reduction <add>, %167, %cst_30 [1] : vector<16x128xf32> to vector<16xf32>
    %169 = vector.shape_cast %168 : vector<16xf32> to vector<16x1xf32>
    %cst_31 = arith.constant 1.280000e+02 : f32
    %170 = vector.broadcast %cst_31 : f32 to vector<16x1xf32>
    %171 = arith.divf %169, %170 : vector<16x1xf32>
    %172 = vector.broadcast %164 : vector<16x1xf32> to vector<16x128xf32>
    %173 = arith.subf %160, %172 : vector<16x128xf32>
    %cst_32 = arith.constant 9.99999996E-13 : f32
    %174 = vector.broadcast %cst_32 : f32 to vector<16x1xf32>
    %175 = arith.addf %171, %174 : vector<16x1xf32>
    %176 = math.rsqrt %175 : vector<16x1xf32>
    %177 = vector.broadcast %176 : vector<16x1xf32> to vector<16x128xf32>
    %178 = arith.mulf %173, %177 : vector<16x128xf32>
    %c0_33 = arith.constant 0 : index
    %c0_34 = arith.constant 0 : index
    %179 = vector.load %arg9[%c0_33, %c0_34] : memref<1x128xf32, #tpu.memory_space<vmem>>, vector<1x128xf32>
    %180 = vector.broadcast %179 : vector<1x128xf32> to vector<16x128xf32>
    %181 = arith.mulf %178, %180 : vector<16x128xf32>
    %c0_35 = arith.constant 0 : index
    %c0_36 = arith.constant 0 : index
    %182 = vector.load %arg10[%c0_35, %c0_36] : memref<1x128xf32, #tpu.memory_space<vmem>>, vector<1x128xf32>
    %183 = vector.broadcast %182 : vector<1x128xf32> to vector<16x128xf32>
    %184 = arith.addf %181, %183 : vector<16x128xf32>
    %c0_37 = arith.constant 0 : index
    %c0_38 = arith.constant 0 : index
    %185 = vector.load %arg11[%c0_37, %c0_38] : memref<16x128xf32, #tpu.memory_space<vmem>>, vector<16x128xf32>
    tpu.vector_store %arg11[%c0_37, %c0_38], %184 {strides = array<i32>} : memref<16x128xf32, #tpu.memory_space<vmem>>, vector<16x128xf32>,
    return
  }
  func.func @transform_0(%arg0: i32) -> (i32, i32) {
    %c0_i32 = arith.constant 0 : i32
    %c0_i32_0 = arith.constant 0 : i32
    return %arg0, %c0_i32 : i32, i32
  }
  func.func @transform_1(%arg0: i32) -> (i32, i32, i32) {
    %c0_i32 = arith.constant 0 : i32
    %c0_i32_0 = arith.constant 0 : i32
    %c0_i32_1 = arith.constant 0 : i32
    return %arg0, %c0_i32, %c0_i32_0 : i32, i32, i32
  }
  func.func @transform_2(%arg0: i32) -> (i32, i32, i32) {
    %c0_i32 = arith.constant 0 : i32
    %c0_i32_0 = arith.constant 0 : i32
    %c0_i32_1 = arith.constant 0 : i32
    return %arg0, %c0_i32, %c0_i32_0 : i32, i32, i32
  }
  func.func @transform_3(%arg0: i32) -> (i32, i32) {
    %c0_i32 = arith.constant 0 : i32
    %c0_i32_0 = arith.constant 0 : i32
    %c0_i32_1 = arith.constant 0 : i32
    return %c0_i32, %c0_i32_0 : i32, i32
  }
  func.func @transform_4(%arg0: i32) -> (i32, i32) {
    %c0_i32 = arith.constant 0 : i32
    %c0_i32_0 = arith.constant 0 : i32
    %c0_i32_1 = arith.constant 0 : i32
    return %c0_i32, %c0_i32_0 : i32, i32
  }
  func.func @transform_5(%arg0: i32) -> (i32, i32) {
    %c0_i32 = arith.constant 0 : i32
    %c0_i32_0 = arith.constant 0 : i32
    %c0_i32_1 = arith.constant 0 : i32
    return %c0_i32, %c0_i32_0 : i32, i32
  }
  func.func @transform_6(%arg0: i32) -> (i32, i32) {
    %c0_i32 = arith.constant 0 : i32
    %c0_i32_0 = arith.constant 0 : i32
    %c0_i32_1 = arith.constant 0 : i32
    return %c0_i32, %c0_i32_0 : i32, i32
  }
  func.func @transform_7(%arg0: i32) -> (i32, i32) {
    %c0_i32 = arith.constant 0 : i32
    %c0_i32_0 = arith.constant 0 : i32
    %c0_i32_1 = arith.constant 0 : i32
    return %c0_i32, %c0_i32_0 : i32, i32
  }
  func.func @transform_8(%arg0: i32) -> (i32, i32) {
    %c0_i32 = arith.constant 0 : i32
    %c0_i32_0 = arith.constant 0 : i32
    %c0_i32_1 = arith.constant 0 : i32
    return %c0_i32, %c0_i32_0 : i32, i32
  }
  func.func @transform_9(%arg0: i32) -> (i32, i32) {
    %c0_i32 = arith.constant 0 : i32
    %c0_i32_0 = arith.constant 0 : i32
    %c0_i32_1 = arith.constant 0 : i32
    return %c0_i32, %c0_i32_0 : i32, i32
  }
  func.func @transform_10(%arg0: i32) -> (i32, i32) {
    %c0_i32 = arith.constant 0 : i32
    %c0_i32_0 = arith.constant 0 : i32
    return %arg0, %c0_i32 : i32, i32
  }
}

</mosaic_0001>

<bundles_post_ra>
// kernel: fn.1
= control target key start
LH: loop header
LB: loop body
LE: loop exit
PB: predicated region body
PF: predicated region fallthrough
CT: control target
= control target key end

     0   :  { %15 = vsyncpa [#allocation3], 0  ;;  %s3261_s0 = inlined_call_operand.hbm [shape: f32[16,128], index: 0, kind: input, shape index: {}]   ;;  %s3262_s1 = inlined_call_operand.vmem [shape: f32[2,1,8], index: 1, kind: input, shape index: {}]   ;;  %s3263_s2 = inlined_call_operand.hbm [shape: s32[2,8,8], index: 2, kind: input, shape index: {}]   ;;  %s3264_s3 = inlined_call_operand.hbm [shape: bf16[128,512], index: 3, kind: input, shape index: {}]   ;;  %s3265_s4 = inlined_call_operand.vmem [shape: f32[1,512], index: 4, kind: input, shape index: {}]   ;;  %s3266_s5 = inlined_call_operand.vmem [shape: f32[4,32], index: 5, kind: input, shape index: {}]   ;;  %s3267_s6 = inlined_call_operand.hbm [shape: bf16[128,128], index: 6, kind: input, shape index: {}]   ;;  %s3268_s7 = inlined_call_operand.vmem [shape: f32[1,128], index: 7, kind: input, shape index: {}]   ;;  %s3269_s8 = inlined_call_operand.vmem [shape: f32[1,128], index: 8, kind: input, shape index: {}]   ;;  %s3270_s9 = inlined_call_operand.vmem [shape: f32[1,128], index: 9, kind: input, shape index: {}]   ;;  %s3271_s10 = inlined_call_operand.hbm [shape: f32[16,128], index: 10, kind: output, shape index: {}]  }
   0x1   :  { %16 = vsyncpa [#allocation6], 0 }
   0x2   :  { %17 = vsyncpa [#allocation9], 0 }
   0x3   :  { %18 = vsyncpa [#allocation4], 0  ;;  %s2645_s13 = smov [#allocation5]   ;;  %s2646_s15 = smov [#allocation2]  }
   0x4   :  { %s38_s14 = sshll.u32 %s2645_s13, 4  ;;  %s24_s16 = sshll.u32 %s2646_s15, 4  ;;  %s39_s14 = int_to_ptr.vmem [resolvable:$true] %s38_s14  ;;  %s2722_s16 = int_to_ptr.vmem [resolvable:$true] %s24_s16 }
   0x5   :  { %s2527_s19 = scalar_lea.hbm %s3263_s2, 256 }
   0x6   :  { %p2528_p0 = scmp.ne.s32.totalorder %s3263_s2, %s2527_s19  ;;  %p2531_p1 = scmp.lt.u32.totalorder %s2527_s19, %s3263_s2 }
   0x8   :  { %p2533_p2 = pnand %p2531_p1, %p2528_p0 }
   0xa   :  { %2536 = shalt.err (!%p2533_p2)
}
   0xb   :  { %s2537_s24 = scalar_lea.vmem %s39_s14, 256  ;;  %p2542_p4 = scmp.lt.s32.totalorder %s39_s14, %s39_s14 }
   0xc   :  { %p2538_p3 = scmp.ne.s32.totalorder %s39_s14, %s2537_s24  ;;  %p2543_p5 = scmp.lt.s32.totalorder %s2537_s24, %s2537_s24 }
   0xe   :  { %p2544_p6 = por %p2543_p5, %p2542_p4 }
  0x10   :  { %p2545_p7 = pnand %p2544_p6, %p2538_p3 }
  0x12   :  { %2548 = shalt.err (!%p2545_p7)
}
  0x13   :  { %s2647_s25 = smov 128   ;;  %s2648_s26 = smov 8  }
  0x14   :  { %44 = dma.hbm_to_vmem [thread:$0]  %s3263_s2, 256, %s39_s14, [#allocation6], %s2647_s25, %s2647_s25, %s2648_s26  }
  0x15   :  { %s2549_s11 = scalar_lea.hbm %s3261_s0, 256 }
  0x16   :  { %p2550_p8 = scmp.ne.s32.totalorder %s3261_s0, %s2549_s11  ;;  %p2553_p9 = scmp.lt.u32.totalorder %s2549_s11, %s3261_s0 }
  0x18   :  { %p2555_p10 = pnand %p2553_p9, %p2550_p8 }
  0x1a   :  { %2558 = shalt.err (!%p2555_p10)
}
  0x1b   :  { %s2559_s18 = scalar_lea.vmem %s2722_s16, 256  ;;  %p2564_p12 = scmp.lt.s32.totalorder %s2722_s16, %s2722_s16 }
  0x1c   :  { %p2560_p11 = scmp.ne.s32.totalorder %s2722_s16, %s2559_s18  ;;  %p2565_p13 = scmp.lt.s32.totalorder %s2559_s18, %s2559_s18 }
  0x1e   :  { %p2566_p0 = por %p2565_p13, %p2564_p12 }
  0x20   :  { %p2567_p1 = pnand %p2566_p0, %p2560_p11 }
  0x22   :  { %2570 = shalt.err (!%p2567_p1)
}
  0x23   :  { %30 = dma.hbm_to_vmem [thread:$0]  %s3261_s0, 256, %s2722_s16, [#allocation3], %s2647_s25, %s2647_s25, %s2648_s26  }
  0x24   :  { %s2649_s19 = smov [#allocation7]   ;;  %s2571_s23 = scalar_lea.hbm %s3264_s3, 4096 }
  0x25   :  { %s50_s20 = sshll.u32 %s2649_s19, 4  ;;  %p2572_p2 = scmp.ne.s32.totalorder %s3264_s3, %s2571_s23  ;;  %s51_s20 = int_to_ptr.vmem [resolvable:$true] %s50_s20 }
  0x26   :  { %p2575_p3 = scmp.lt.u32.totalorder %s2571_s23, %s3264_s3 }
  0x28   :  { %p2577_p4 = pnand %p2575_p3, %p2572_p2 }
  0x2a   :  { %2580 = shalt.err (!%p2577_p4)
}
  0x2b   :  { %s2581_s30 = scalar_lea.vmem %s51_s20, 4096  ;;  %p2586_p6 = scmp.lt.s32.totalorder %s51_s20, %s51_s20 }
  0x2c   :  { %p2582_p5 = scmp.ne.s32.totalorder %s51_s20, %s2581_s30  ;;  %p2587_p7 = scmp.lt.s32.totalorder %s2581_s30, %s2581_s30 }
  0x2e   :  { %p2588_p8 = por %p2587_p7, %p2586_p6 }
  0x30   :  { %p2589_p9 = pnand %p2588_p8, %p2582_p5 }
  0x32   :  { %2592 = shalt.err (!%p2589_p9)
}
  0x33   :  { %s2650_s0 = smov 256   ;;  %s2651_s16 = smov 16  }
  0x34   :  { %56 = dma.hbm_to_vmem [thread:$0]  %s3264_s3, 4096, %s51_s20, [#allocation6], %s2650_s0, %s2650_s0, %s2651_s16  }
  0x35   :  { %s2652_s13 = smov [#allocation8]   ;;  %s2593_s2 = scalar_lea.hbm %s3267_s6, 1024 }
  0x36   :  { %s66_s15 = sshll.u32 %s2652_s13, 4  ;;  %p2594_p10 = scmp.ne.s32.totalorder %s3267_s6, %s2593_s2  ;;  %s67_s15 = int_to_ptr.vmem [resolvable:$true] %s66_s15 }
  0x37   :  { %p2597_p11 = scmp.lt.u32.totalorder %s2593_s2, %s3267_s6 }
  0x39   :  { %p2599_p12 = pnand %p2597_p11, %p2594_p10 }
  0x3b   :  { %2602 = shalt.err (!%p2599_p12)
}
  0x3c   :  { %s2603_s23 = scalar_lea.vmem %s67_s15, 1024  ;;  %p2608_p0 = scmp.lt.s32.totalorder %s67_s15, %s67_s15 }
  0x3d   :  { %p2604_p13 = scmp.ne.s32.totalorder %s67_s15, %s2603_s23  ;;  %p2609_p1 = scmp.lt.s32.totalorder %s2603_s23, %s2603_s23 }
  0x3f   :  { %p2610_p2 = por %p2609_p1, %p2608_p0 }
  0x41   :  { %p2611_p3 = pnand %p2610_p2, %p2604_p13 }
  0x43   :  { %2614 = shalt.err (!%p2611_p3)
}
  0x44   :  { %s2653_s3 = smov 64   ;;  %s2654_s20 = smov 4  }
  0x45   :  { %72 = dma.hbm_to_vmem [thread:$0]  %s3267_s6, 1024, %s67_s15, [#allocation9], %s2653_s3, %s2653_s3, %s2654_s20  }
  0x46   :  { %2637 = dma.done.wait [#allocation3], 256  }
  0x47   :  { %2638 = vsyncadd [#allocation3], 4294967040 }
  0x48   :  { %2639 = dma.done.wait [#allocation6], 4352  }
  0x49   :  { %2640 = vsyncadd [#allocation6], 4294962944 }
  0x4a   :  { %2641 = dma.done.wait [#allocation9], 1024  }
  0x4b   :  { %2642 = vsyncadd [#allocation9], 4294966272  ;;  %v2655_v0 = vmov 0   ;;  %v2433_v1 = vld [vmem:[#allocation7 + $0x4] ss:$16 sps:$4 sm:$0xff]   ;;  %v93_v30 = vld [vmem:[#allocation2 + $0x8] sm:$0xff]  ;;  %v129_v38 = vlaneseq }
  0x4c   :  { %341 = vmatprep.mubr.bf16.mxu0 %v2655_v0  ;;  %384 = vmatprep.mubr.bf16.mxu1 %v2655_v0  ;;  %v2435_v2 = vld [vmem:[#allocation7] ss:$16 sps:$4 sm:$0xff]   ;;  %v2436_v3 = vld [vmem:[#allocation7 + $0x24] ss:$16 sps:$4 sm:$0xff]   ;;  %v2447_v7 = vld [vmem:[#allocation7 + $0xc] ss:$16 sps:$4 sm:$0xff]  }
  0x4d   :  { %2376 = vset.pattern.permute.xlu0 %v2655_v0  ;;  %309 = vmatprep.subr.bf16.mxu0 %v2433_v1  ;;  %v2438_v4 = vld [vmem:[#allocation7 + $0x20] ss:$16 sps:$4 sm:$0xff]   ;;  %v2439_v5 = vld [vmem:[#allocation7 + $0x44] ss:$16 sps:$4 sm:$0xff]   ;;  %v2450_v8 = vld [vmem:[#allocation7 + $0x8] ss:$16 sps:$4 sm:$0xff]  }
  0x4e   :  { %310 = vmatpush1.bf16.msra.mxu0 %v2435_v2  ;;  %v2441_v6 = vld [vmem:[#allocation7 + $0x40] ss:$16 sps:$4 sm:$0xff]   ;;  %v2442_v9 = vld [vmem:[#allocation7 + $0x64] ss:$16 sps:$4 sm:$0xff]   ;;  %352 = vmatprep.subr.bf16.mxu1 %v2447_v7  ;;  %v2453_v10 = vld [vmem:[#allocation7 + $0x2c] ss:$16 sps:$4 sm:$0xff]  }
  0x4f   :  { %311 = vmatprep.subr.bf16.mxu0 %v2436_v3  ;;  %353 = vmatpush1.bf16.msra.mxu1 %v2450_v8  ;;  %v2456_v11 = vld [vmem:[#allocation7 + $0x28] ss:$16 sps:$4 sm:$0xff]   ;;  %v2444_v12 = vld [vmem:[#allocation7 + $0x60] ss:$16 sps:$4 sm:$0xff]   ;;  %v2445_v13 = vld [vmem:[#allocation7 + $0x84] ss:$16 sps:$4 sm:$0xff]  }
  0x50   :  { %354 = vmatprep.subr.bf16.mxu1 %v2453_v10  ;;  %v2459_v14 = vld [vmem:[#allocation7 + $0x4c] ss:$16 sps:$4 sm:$0xff]   ;;  %v2462_v15 = vld [vmem:[#allocation7 + $0x48] ss:$16 sps:$4 sm:$0xff]   ;;  %v2449_v16 = vld [vmem:[#allocation7 + $0x80] ss:$16 sps:$4 sm:$0xff]  }
  0x51   :  { %v2465_v17 = vld [vmem:[#allocation7 + $0x6c] ss:$16 sps:$4 sm:$0xff]   ;;  %v2451_v18 = vld [vmem:[#allocation7 + $0xa4] ss:$16 sps:$4 sm:$0xff]   ;;  %v2455_v19 = vld [vmem:[#allocation7 + $0xa0] ss:$16 sps:$4 sm:$0xff]  }
  0x52   :  { %312 = vmatpush1.bf16.msra.mxu0 %v2438_v4  ;;  %v2468_v20 = vld [vmem:[#allocation7 + $0x68] ss:$16 sps:$4 sm:$0xff]   ;;  %v2469_v21 = vld [vmem:[#allocation7 + $0x8c] ss:$16 sps:$4 sm:$0xff]   ;;  %v2457_v22 = vld [vmem:[#allocation7 + $0xc4] ss:$16 sps:$4 sm:$0xff]  }
  0x53   :  { %313 = vmatprep.subr.bf16.mxu0 %v2439_v5  ;;  %355 = vmatpush1.bf16.msra.mxu1 %v2456_v11  ;;  %v2461_v23 = vld [vmem:[#allocation7 + $0xc0] ss:$16 sps:$4 sm:$0xff]   ;;  %v2471_v24 = vld [vmem:[#allocation7 + $0x88] ss:$16 sps:$4 sm:$0xff]   ;;  %v2463_v25 = vld [vmem:[#allocation7 + $0xe4] ss:$16 sps:$4 sm:$0xff]  }
  0x54   :  { %356 = vmatprep.subr.bf16.mxu1 %v2459_v14  ;;  %v2472_v26 = vld [vmem:[#allocation7 + $0xac] ss:$16 sps:$4 sm:$0xff]   ;;  %v2474_v27 = vld [vmem:[#allocation7 + $0xa8] ss:$16 sps:$4 sm:$0xff]   ;;  %v2467_v28 = vld [vmem:[#allocation7 + $0xe0] ss:$16 sps:$4 sm:$0xff]  }
  0x55   :  { %v92_v29 = vld [vmem:[#allocation2] sm:$0xff]  ;;  %v2475_v31 = vld [vmem:[#allocation7 + $0xcc] ss:$16 sps:$4 sm:$0xff]   ;;  %v2477_v33 = vld [vmem:[#allocation7 + $0xc8] ss:$16 sps:$4 sm:$0xff]   ;;  %v2656_v36 = vmov 0.0  }
  0x56   :  { %314 = vmatpush1.bf16.msra.mxu0 %v2441_v6  ;;  %v94_v32 = vpack.c.bf16 %v93_v30, %v92_v29  ;;  %v2478_v34 = vld [vmem:[#allocation7 + $0xec] ss:$16 sps:$4 sm:$0xff]   ;;  %v2480_v35 = vld [vmem:[#allocation7 + $0xe8] ss:$16 sps:$4 sm:$0xff]   ;;  %vm2657_vm0 = vmmov 0   ;;  %v2658_v37 = vmov 1  }
  0x57   :  { %315 = vmatprep.subr.bf16.mxu0 %v2442_v9  ;;  %357 = vmatpush1.bf16.msra.mxu1 %v2462_v15  ;;  %v130_v39 = vshrl.u32 %v129_v38, 7  ;;  %v127_v41 = vld [vmem:[%s3265_s4] sm:$0xf]  ;;  %vm717_vm1 = vcmask 261120   ;;  %s2659_s4 = smov 96   ;;  %s2660_s29 = smov 32  }
  0x58   :  { %358 = vmatprep.subr.bf16.mxu1 %v2465_v17  ;;  %2377 = vset.pattern.permute.xlu1 %v2658_v37  ;;  %s2661_s30 = smov 124   ;;  %v2662_v10 = vmov 2   ;;  %s2663_s0 = smov 120   ;;  %v2664_v11 = vmov 3   ;;  %vm1102_vm10 = vcmask 64512   ;;  %vm1380_vm11 = vcmask 1043456  }
  0x59   :  { %v135_v40 = vsub.s32 1, %v130_v39  ;;  %v131_v42 = vsub.s32 0, %v130_v39  ;;  %v139_v46 = vsub.s32 2, %v130_v39  ;;  %v143_v61 = vsub.s32 3, %v130_v39  ;;  %s2665_s16 = smov 116   ;;  %s2666_s21 = smov [#allocation10]  }
  0x5a   :  { %316 = vmatpush1.bf16.msra.mxu0 %v2444_v12  ;;  %vm1327_vm12 = vcmask 7168   ;;  %vm1336_vm13 = vcmask 15360   ;;  %vm1345_vm14 = vcmask 23552   ;;  %vm1355_vm15 = vcmask 31744   ;;  %s2052_s22 = sshll.u32 %s2666_s21, 4  ;;  %s2053_s22 = int_to_ptr.vmem [resolvable:$true] %s2052_s22 }
  0x5b   :  { %317 = vmatprep.subr.bf16.mxu0 %v2445_v13  ;;  %359 = vmatpush1.bf16.msra.mxu1 %v2468_v20  ;;  %v136_v43 = vrot.slane %v127_v41, %v135_v40  ;;  %v132_v44 = vrot.slane %v127_v41, %v131_v42  ;;  %v140_v55 = vrot.slane %v127_v41, %v139_v46  ;;  %s2615_s23 = scalar_lea.vmem %s2053_s22, 256  ;;  %p2620_p5 = scmp.lt.s32.totalorder %s2053_s22, %s2053_s22 }
  0x5c   :  { %360 = vmatprep.subr.bf16.mxu1 %v2469_v21  ;;  %v144_v6 = vrot.slane %v127_v41, %v143_v61  ;;  %v494_v61 = vld [vmem:[#allocation5 + $0x8] sm:$0xff]  ;;  %p2616_p4 = scmp.ne.s32.totalorder %s2053_s22, %s2615_s23  ;;  %p2621_p6 = scmp.lt.s32.totalorder %s2615_s23, %s2615_s23 }
  0x5d   :  { %vm496_vm5 = vcmp.eq.s32.totalorder %v494_v61, 0  ;;  %vm502_vm6 = vcmp.eq.s32.totalorder %v494_v61, 1  ;;  %vm508_vm8 = vcmp.eq.s32.totalorder %v494_v61, 2  ;;  %vm514_vm9 = vcmp.eq.s32.totalorder %v494_v61, 3 }
  0x5e   :  { %318 = vmatpush1.bf16.msra.mxu0 %v2449_v16  ;;  %p2622_p7 = por %p2621_p6, %p2620_p5 }
  0x5f   :  { %319 = vmatprep.subr.bf16.mxu0 %v2451_v18  ;;  %361 = vmatpush1.bf16.msra.mxu1 %v2471_v24 }
  0x60   :  { %362 = vmatprep.subr.bf16.mxu1 %v2472_v26  ;;  %p2623_p8 = pnand %p2622_p7, %p2616_p4 }
  0x62   :  { %320 = vmatpush1.bf16.msra.mxu0 %v2455_v19 }
  0x63   :  { %321 = vmatprep.subr.bf16.mxu0 %v2457_v22  ;;  %363 = vmatpush1.bf16.msra.mxu1 %v2474_v27 }
  0x64   :  { %364 = vmatprep.subr.bf16.mxu1 %v2475_v31 }
  0x66   :  { %322 = vmatpush1.bf16.msra.mxu0 %v2461_v23 }
  0x67   :  { %323 = vmatprep.subr.bf16.mxu0 %v2463_v25  ;;  %365 = vmatpush1.bf16.msra.mxu1 %v2477_v33 }
  0x68   :  { %366 = vmatprep.subr.bf16.mxu1 %v2478_v34 }
  0x6a   :  { %324 = vmatpush1.bf16.msra.mxu0 %v2467_v28 }
  0x6b   :  { %367 = vmatpush1.bf16.msra.mxu1 %v2480_v35  ;;  %2194 = vmatprep.subr.bf16.mxu0 %v2656_v36 }
  0x6c   :  { %2200 = vmatprep.subr.bf16.mxu1 %v2656_v36 }
  0x6d   :  { %342 = vmatmul.mubr.bf16.vlgmr.msra.gmra.mrb[0].mxu0 %v94_v32 }
  0x6e   :  { %385 = vmatmul.mubr.bf16.vlgmr.msra.gmra.mrb[0].mxu1 %v94_v32  ;;  %2196 = vmatprep.mubr.msk.bf16.mxu0 %vm2657_vm0, %v2656_v36 }
  0x6f   :  { %2202 = vmatprep.mubr.msk.bf16.mxu1 %vm2657_vm0, %v2656_v36 }
 0x140   :  { %v343_v45 = vpop.f32.mrb[0].mxu0 }
 0x141   :  { %v345_v47 = vpop.f32.mrb[1].mxu0  ;;  %v344_v50 = vadd.f32 %v343_v45, %v132_v44  ;;  %v386_v60 = vpop.f32.mrb[0].mxu1 }
 0x142   :  { %v346_v48 = vadd.f32 %v345_v47, %v136_v43  ;;  %v347_v49 = vpop.f32.mrb[2].mxu0  ;;  %v2802_v63 = vadd.f32 %v386_v60, %v140_v55  ;;  %v388_v1 = vpop.f32.mrb[1].mxu1 }
 0x143   :  { %v348_v51 = vadd.f32 %v347_v49, %v132_v44  ;;  %v349_v52 = vpop.f32.mrb[3].mxu0  ;;  %v390_v2 = vpop.f32.mrb[2].mxu1  ;;  %v415_v5 = vpack.c.bf16 %v344_v50, %v344_v50  ;;  %v389_v9 = vadd.f32 %v388_v1, %v144_v6 }
 0x144   :  { %v350_v53 = vadd.f32 %v349_v52, %v136_v43  ;;  %v443_v54 = vpack.c.bf16 %v346_v48, %v346_v48  ;;  %v2805_v3 = vadd.f32 %v390_v2, %v140_v55  ;;  %v392_v4 = vpop.f32.mrb[3].mxu1 }
 0x145   :  { %v2361_v56 = vpack.i.bf16 %v348_v51, %v344_v50  ;;  %v416_v8 = vpack.c.bf16 %v348_v51, %v348_v51  ;;  %v393_v12 = vadd.f32 %v392_v4, %v144_v6  ;;  %v2886_v6 = vsel %vm496_vm5, 1.0, %v2656_v36 }
 0x146   :  { %v722_v57 = vsel %vm717_vm1, %v443_v54, 0  ;;  %v2356_v58 = vpack.i.bf16 %v350_v53, %v346_v48  ;;  %v444_v59 = vpack.c.bf16 %v350_v53, %v350_v53  ;;  %v2812_v7 = vpack.i.bf16 %v2805_v3, %v2802_v63 }
 0x147   :  { %2195 = vmatpush3.bf16.xpose.msra.mxu0 %v722_v57 }
 0x148   :  { %2357 = vrot.lane.b32.xlu1 %v2356_v58, %s2653_s3  ;;  %2347 = vrot.lane.b32.xlu0 %v2356_v58, %s2659_s4  ;;  %v768_v62 = vsel %vm717_vm1, %v444_v59, 0 }
 0x149   :  { %2201 = vmatpush3.bf16.xpose.msra.mxu1 %v768_v62  ;;  %2206 = vmatprep.subr.bf16.mxu0 %v2656_v36 }
 0x14a   :  { %2212 = vmatprep.subr.bf16.mxu1 %v2656_v36 }
 0x14c   :  { %2362 = vrot.lane.b32.xlu1 %v2361_v56, %s2653_s3  ;;  %2352 = vrot.lane.b32.xlu0 %v2361_v56, %s2659_s4 }
 0x14e   :  { %2197 = vmatmul.mubr.msk.bf16.vlgmr.msra.gmra.mrb[4].mxu0 %vm717_vm1, %v415_v5 }
 0x14f   :  { %2208 = vmatprep.mubr.msk.bf16.mxu0 %vm2657_vm0, %v2656_v36 }
 0x150   :  { %2203 = vmatmul.mubr.msk.bf16.vlgmr.msra.gmra.mrb[4].mxu1 %vm717_vm1, %v416_v8  ;;  %2372 = vrot.lane.b32.xlu1 %v2361_v56, %s2660_s29  ;;  %v2889_v8 = vsel %vm502_vm6, 1.0, %v2656_v36 }
 0x151   :  { %2367 = vrot.lane.b32.xlu0 %v2356_v58, %s2660_s29  ;;  %2214 = vmatprep.mubr.msk.bf16.mxu1 %vm2657_vm0, %v2656_v36 }
 0x154   :  { %560 = vperm.xlu1 %2377, %v389_v9  }
 0x155   :  { %481 = vrot.lane.b32.xlu0 %v389_v9, %s2661_s30 }
 0x158   :  { %2378 = vset.pattern.permute.xlu1 %v2662_v10 }
 0x159   :  { %608 = vperm.xlu1 %2378, %v389_v9   ;;  %485 = vrot.lane.b32.xlu0 %v389_v9, %s2663_s0 }
 0x15d   :  { %2379 = vset.pattern.permute.xlu1 %v2664_v11  ;;  %489 = vrot.lane.b32.xlu0 %v389_v9, %s2665_s16 }
 0x15e   :  { %656 = vperm.xlu1 %2379, %v389_v9  }
 0x161   :  { %520 = vperm.xlu0 %2376, %v389_v9  }
 0x162   :  { %483 = vrot.lane.b32.xlu1 %v393_v12, %s2661_s30 }
 0x163   :  { %2380 = vset.pattern.permute.xlu1 %v2655_v0 }
 0x165   :  { %2381 = vset.pattern.permute.xlu0 %v2658_v37 }
 0x166   :  { %487 = vrot.lane.b32.xlu1 %v393_v12, %s2663_s0  ;;  %564 = vperm.xlu0 %2381, %v393_v12  }
 0x16a   :  { %491 = vrot.lane.b32.xlu1 %v393_v12, %s2665_s16  ;;  %2383 = vset.pattern.permute.xlu0 %v2664_v11 }
 0x16b   :  { %660 = vperm.xlu0 %2383, %v393_v12  }
 0x16e   :  { %524 = vperm.xlu1 %2380, %v393_v12  }
 0x16f   :  { %2384 = vset.pattern.permute.xlu0 %v2655_v0 }
 0x172   :  { %2382 = vset.pattern.permute.xlu1 %v2662_v10 }
 0x173   :  { %612 = vperm.xlu1 %2382, %v393_v12  }
 0x177   :  { %2385 = vset.pattern.permute.xlu1 %v2658_v37 }
 0x1ba   :  { %v2348_v13 = vpop.permute.xlu0 %2347  ;;  %v2358_v16 = vpop.permute.xlu1 %2357 }
 0x1bb   :  { %v2350_v14 = vunpack.i.h.bf16 %v2348_v13  ;;  %v2349_v15 = vunpack.i.l.bf16 %v2348_v13  ;;  %v2359_v20 = vunpack.i.l.bf16 %v2358_v16  ;;  %v2360_v23 = vunpack.i.h.bf16 %v2358_v16 }
 0x1bd   :  { %v446_v17 = vpack.c.bf16 %v2350_v14, %v2350_v14  ;;  %v445_v18 = vpack.c.bf16 %v2349_v15, %v2349_v15  ;;  %v447_v27 = vpack.c.bf16 %v2359_v20, %v2359_v20  ;;  %v448_v28 = vpack.c.bf16 %v2360_v23, %v2360_v23 }
 0x1be   :  { %v2353_v19 = vpop.permute.xlu0 %2352  ;;  %v2363_v30 = vpop.permute.xlu1 %2362  ;;  %v2898_v15 = vsel %vm508_vm8, 1.0, %v2656_v36 }
 0x1bf   :  { %v814_v21 = vsel %vm717_vm1, %v445_v18, 0  ;;  %v860_v22 = vsel %vm717_vm1, %v446_v17, 0  ;;  %v2354_v24 = vunpack.i.l.bf16 %v2353_v19  ;;  %v2355_v25 = vunpack.i.h.bf16 %v2353_v19 }
 0x1c0   :  { %2207 = vmatpush3.bf16.xpose.msra.mxu0 %v814_v21  ;;  %2213 = vmatpush3.bf16.xpose.msra.mxu1 %v860_v22  ;;  %v906_v33 = vsel %vm717_vm1, %v447_v27, 0  ;;  %v952_v38 = vsel %vm717_vm1, %v448_v28, 0  ;;  %v2364_v39 = vunpack.i.l.bf16 %v2363_v30  ;;  %v2365_v40 = vunpack.i.h.bf16 %v2363_v30 }
 0x1c1   :  { %2218 = vmatprep.subr.bf16.mxu0 %v2656_v36  ;;  %2224 = vmatprep.subr.bf16.mxu1 %v2656_v36  ;;  %v417_v29 = vpack.c.bf16 %v2354_v24, %v2354_v24  ;;  %v418_v31 = vpack.c.bf16 %v2355_v25, %v2355_v25  ;;  %v2903_v21 = vsel %vm514_vm9, 1.0, %v2656_v36 }
 0x1c2   :  { %v419_v43 = vpack.c.bf16 %v2364_v39, %v2364_v39  ;;  %v420_v44 = vpack.c.bf16 %v2365_v40, %v2365_v40  ;;  %v2373_v45 = vpop.permute.xlu1 %2372 }
 0x1c3   :  { %v2368_v26 = vpop.permute.xlu0 %2367  ;;  %v2375_v49 = vunpack.i.h.bf16 %v2373_v45  ;;  %v2374_v50 = vunpack.i.l.bf16 %v2373_v45 }
 0x1c4   :  { %v2370_v34 = vunpack.i.h.bf16 %v2368_v26  ;;  %v2369_v35 = vunpack.i.l.bf16 %v2368_v26 }
 0x1c5   :  { %v422_v53 = vpack.c.bf16 %v2375_v49, %v2375_v49  ;;  %v421_v54 = vpack.c.bf16 %v2374_v50, %v2374_v50 }
 0x1c6   :  { %v450_v41 = vpack.c.bf16 %v2370_v34, %v2370_v34  ;;  %v449_v42 = vpack.c.bf16 %v2369_v35, %v2369_v35 }
 0x1c7   :  { %v482_v32 = vpop.permute.xlu0 %481  ;;  %2209 = vmatmul.mubr.msk.bf16.vlgmr.msra.gmra.mrb[8].mxu0 %vm717_vm1, %v417_v29  ;;  %2215 = vmatmul.mubr.msk.bf16.vlgmr.msra.gmra.mrb[8].mxu1 %vm717_vm1, %v418_v31  ;;  %v2909_v31 = vld [vmem:[%s3262_s1] ss:$0 sm:$0xff] }
 0x1c8   :  { %568 = vperm.xlu1 %2385, %v482_v32   ;;  %2219 = vmatpush3.bf16.xpose.msra.mxu0 %v906_v33  ;;  %v998_v47 = vsel %vm717_vm1, %v449_v42, 0  ;;  %v1044_v48 = vsel %vm717_vm1, %v450_v41, 0 }
 0x1c9   :  { %2225 = vmatpush3.bf16.xpose.msra.mxu1 %v952_v38  ;;  %2220 = vmatprep.mubr.msk.bf16.mxu0 %vm2657_vm0, %v2656_v36 }
 0x1ca   :  { %2226 = vmatprep.mubr.msk.bf16.mxu1 %vm2657_vm0, %v2656_v36  ;;  %2230 = vmatprep.subr.bf16.mxu0 %v2656_v36 }
 0x1cb   :  { %2236 = vmatprep.subr.bf16.mxu1 %v2656_v36  ;;  %528 = vperm.xlu0 %2384, %v482_v32   ;;  %v486_v46 = vpop.permute.xlu0 %485 }
 0x1cc   :  { %2386 = vset.pattern.permute.xlu1 %v2662_v10 }
 0x1cd   :  { %616 = vperm.xlu1 %2386, %v482_v32  }
 0x1cf   :  { %2221 = vmatmul.mubr.msk.bf16.vlgmr.msra.gmra.mrb[12].mxu0 %vm717_vm1, %v419_v43  ;;  %536 = vperm.xlu0 %2384, %v486_v46   ;;  %v490_v52 = vpop.permute.xlu0 %489 }
 0x1d0   :  { %2227 = vmatmul.mubr.msk.bf16.vlgmr.msra.gmra.mrb[12].mxu1 %vm717_vm1, %v420_v44  ;;  %2231 = vmatpush3.bf16.xpose.msra.mxu0 %v998_v47  ;;  %v2919_v44 = vld [vmem:[%s3262_s1 + $0x1] ss:$0 sm:$0xff] }
 0x1d1   :  { %2387 = vset.pattern.permute.xlu1 %v2658_v37  ;;  %2237 = vmatpush3.bf16.xpose.msra.mxu1 %v1044_v48 }
 0x1d2   :  { %576 = vperm.xlu1 %2387, %v486_v46   ;;  %2232 = vmatprep.mubr.msk.bf16.mxu0 %vm2657_vm0, %v2656_v36 }
 0x1d3   :  { %v561_v51 = vpop.permute.xlu1 %560  ;;  %2238 = vmatprep.mubr.msk.bf16.mxu1 %vm2657_vm0, %v2656_v36  ;;  %2268 = vmatprep.subr.bf16.mxu0 %v2656_v36 }
 0x1d4   :  { %544 = vperm.xlu0 %2384, %v490_v52  }
 0x1d6   :  { %2388 = vset.pattern.permute.xlu1 %v2664_v11 }
 0x1d7   :  { %664 = vperm.xlu1 %2388, %v482_v32   ;;  %2233 = vmatmul.mubr.msk.bf16.vlgmr.msra.gmra.mrb[16].mxu0 %vm717_vm1, %v421_v54 }
 0x1d8   :  { %v609_v55 = vpop.permute.xlu1 %608  ;;  %2239 = vmatmul.mubr.msk.bf16.vlgmr.msra.gmra.mrb[16].mxu1 %vm717_vm1, %v422_v53  ;;  %2270 = vmatprep.mubr.msk.bf16.mxu0 %vm2657_vm0, %v2656_v36 }
 0x1db   :  { %2389 = vset.pattern.permute.xlu1 %v2662_v10 }
 0x1dc   :  { %624 = vperm.xlu1 %2389, %v486_v46  }
 0x1dd   :  { %v657_v56 = vpop.permute.xlu1 %656 }
 0x1e0   :  { %2390 = vset.pattern.permute.xlu1 %v2658_v37  ;;  %v521_v60 = vpop.permute.xlu0 %520 }
 0x1e1   :  { %v484_v57 = vpop.permute.xlu1 %483  ;;  %584 = vperm.xlu1 %2390, %v490_v52  }
 0x1e2   :  { %532 = vperm.xlu0 %2384, %v484_v57  }
 0x1e5   :  { %v488_v58 = vpop.permute.xlu1 %487  ;;  %2391 = vset.pattern.permute.xlu1 %v2664_v11  ;;  %v565_v9 = vpop.permute.xlu0 %564 }
 0x1e6   :  { %540 = vperm.xlu0 %2384, %v488_v58   ;;  %672 = vperm.xlu1 %2391, %v486_v46   ;;  %v592_v13 = vmul.f32 %v2889_v8, %v565_v9 }
 0x1e9   :  { %v492_v59 = vpop.permute.xlu1 %491 }
 0x1ea   :  { %2396 = vset.pattern.permute.xlu0 %v2664_v11  ;;  %2392 = vset.pattern.permute.xlu1 %v2662_v10  ;;  %v661_v22 = vpop.permute.xlu0 %660 }
 0x1eb   :  { %668 = vperm.xlu0 %2396, %v484_v57   ;;  %632 = vperm.xlu1 %2392, %v490_v52   ;;  %v688_v24 = vmul.f32 %v2903_v21, %v661_v22 }
 0x1ef   :  { %2398 = vset.pattern.permute.xlu0 %v2655_v0  ;;  %2393 = vset.pattern.permute.xlu1 %v2658_v37  ;;  %v493_v0 = vld [vmem:[#allocation5] sm:$0xff] }
 0x1f0   :  { %548 = vperm.xlu0 %2398, %v492_v59   ;;  %572 = vperm.xlu1 %2393, %v484_v57   ;;  %vm501_vm2 = vcmp.eq.s32.totalorder %v493_v0, 1  ;;  %vm495_vm3 = vcmp.eq.s32.totalorder %v493_v0, 0  ;;  %vm507_vm4 = vcmp.eq.s32.totalorder %v493_v0, 2  ;;  %vm513_vm7 = vcmp.eq.s32.totalorder %v493_v0, 3 }
 0x1f1   :  { %v2875_v62 = vsel %vm501_vm2, 1.0, %v2656_v36  ;;  %v2878_v1 = vsel %vm495_vm3, 1.0, %v2656_v36  ;;  %v2883_v5 = vsel %vm507_vm4, 1.0, %v2656_v36  ;;  %v2895_v14 = vsel %vm513_vm7, 1.0, %v2656_v36 }
 0x1f2   :  { %v591_v2 = vmul.f32 %v2875_v62, %v561_v51  ;;  %v551_v4 = vmul.f32 %v2878_v1, %v521_v60  ;;  %v687_v17 = vmul.f32 %v2895_v14, %v657_v56  ;;  %vm1886_vm2 = vcmask 785408  }
 0x1f4   :  { %2400 = vset.pattern.permute.xlu0 %v2664_v11  ;;  %2394 = vset.pattern.permute.xlu1 %v2662_v10 }
 0x1f5   :  { %676 = vperm.xlu0 %2400, %v488_v58   ;;  %620 = vperm.xlu1 %2394, %v484_v57  }
 0x1f9   :  { %680 = vperm.xlu0 %2400, %v490_v52   ;;  %2395 = vset.pattern.permute.xlu1 %v2658_v37 }
 0x1fa   :  { %580 = vperm.xlu1 %2395, %v488_v58  }
 0x1fe   :  { %2397 = vset.pattern.permute.xlu1 %v2662_v10 }
 0x1ff   :  { %628 = vperm.xlu1 %2397, %v488_v58  }
 0x203   :  { %2399 = vset.pattern.permute.xlu1 %v2658_v37  ;;  %v525_v37 = vpop.permute.xlu1 %524 }
 0x204   :  { %588 = vperm.xlu1 %2399, %v492_v59   ;;  %v552_v12 = vmul.f32 %v2886_v6, %v525_v37 }
 0x206   :  { %v600_v18 = vadd.f32 %v592_v13, %v552_v12 }
 0x207   :  { %v613_v16 = vpop.permute.xlu1 %612 }
 0x208   :  { %2401 = vset.pattern.permute.xlu1 %v2662_v10  ;;  %v639_v10 = vmul.f32 %v2883_v5, %v609_v55  ;;  %v640_v19 = vmul.f32 %v2898_v15, %v613_v16 }
 0x209   :  { %636 = vperm.xlu1 %2401, %v492_v59  }
 0x20a   :  { %v648_v23 = vadd.f32 %v640_v19, %v600_v18 }
 0x20c   :  { %v696_v33 = vadd.f32 %v688_v24, %v648_v23 }
 0x20d   :  { %2402 = vset.pattern.permute.xlu1 %v2664_v11  ;;  %v599_v11 = vadd.f32 %v591_v2, %v551_v4 }
 0x20e   :  { %684 = vperm.xlu1 %2402, %v492_v59  }
 0x20f   :  { %v647_v20 = vadd.f32 %v639_v10, %v599_v11 }
 0x211   :  { %v695_v25 = vadd.f32 %v687_v17, %v647_v20 }
 0x221   :  { %v758_v26 = vpop.f32.mrb[4].mxu0 }
 0x222   :  { %v759_v27 = vadd.f32 %v758_v26, %v695_v25  ;;  %v2198_v28 = vpop.f32.mrb[5].mxu0 }
 0x223   :  { %v761_v29 = vpop.f32.mrb[6].mxu0  ;;  %v804_v30 = vpop.f32.mrb[4].mxu1 }
 0x224   :  { %v1086_v32 = vmul.f32 0.17677669, %v759_v27  ;;  %v2199_v34 = vpop.f32.mrb[7].mxu0  ;;  %v2204_v35 = vpop.f32.mrb[5].mxu1  ;;  %v805_v39 = vadd.f32 %v804_v30, %v696_v33 }
 0x225   :  { %v807_v38 = vpop.f32.mrb[6].mxu1 }
 0x226   :  { %v2205_v40 = vpop.f32.mrb[7].mxu1  ;;  %v2912_v41 = vadd.f32 %v2909_v31, %v1086_v32  ;;  %v1087_v43 = vmul.f32 0.17677669, %v805_v39 }
 0x228   :  { %v1103_v42 = vsel %vm1102_vm10, %v2912_v41, -inf  ;;  %v2922_v45 = vadd.f32 %v2919_v44, %v1087_v43 }
 0x229   :  { %1104 = vmax.xlane.f32.xlu0 %v1103_v42 }
 0x22a   :  { %v1106_v46 = vsel %vm1102_vm10, %v2922_v45, -inf }
 0x232   :  { %1107 = vmax.xlane.f32.xlu1 %v1106_v46 }
 0x247   :  { %v569_v47 = vpop.permute.xlu1 %568 }
 0x248   :  { %v593_v37 = vmul.f32 %v2875_v62, %v569_v47 }
 0x24a   :  { %v529_v53 = vpop.permute.xlu0 %528 }
 0x24b   :  { %v553_v2 = vmul.f32 %v2878_v1, %v529_v53 }
 0x24c   :  { %v617_v48 = vpop.permute.xlu1 %616 }
 0x24d   :  { %v641_v11 = vmul.f32 %v2883_v5, %v617_v48  ;;  %v601_v12 = vadd.f32 %v593_v37, %v553_v2 }
 0x24e   :  { %v537_v55 = vpop.permute.xlu0 %536 }
 0x24f   :  { %v555_v23 = vmul.f32 %v2878_v1, %v537_v55  ;;  %v649_v24 = vadd.f32 %v641_v11, %v601_v12 }
 0x251   :  { %v577_v49 = vpop.permute.xlu1 %576 }
 0x252   :  { %v595_v20 = vmul.f32 %v2875_v62, %v577_v49 }
 0x253   :  { %v545_v57 = vpop.permute.xlu0 %544 }
 0x254   :  { %v603_v28 = vadd.f32 %v595_v20, %v555_v23 }
 0x256   :  { %v665_v50 = vpop.permute.xlu1 %664 }
 0x257   :  { %v689_v22 = vmul.f32 %v2895_v14, %v665_v50 }
 0x259   :  { %v697_v32 = vadd.f32 %v689_v22, %v649_v24 }
 0x25b   :  { %v625_v51 = vpop.permute.xlu1 %624 }
 0x25c   :  { %v643_v29 = vmul.f32 %v2883_v5, %v625_v51 }
 0x25e   :  { %v651_v50 = vadd.f32 %v643_v29, %v603_v28 }
 0x260   :  { %v585_v52 = vpop.permute.xlu1 %584 }
 0x261   :  { %v533_v59 = vpop.permute.xlu0 %532  ;;  %v597_v37 = vmul.f32 %v2875_v62, %v585_v52 }
 0x262   :  { %v554_v13 = vmul.f32 %v2886_v6, %v533_v59 }
 0x265   :  { %v673_v54 = vpop.permute.xlu1 %672  ;;  %v541_v60 = vpop.permute.xlu0 %540 }
 0x266   :  { %v556_v33 = vmul.f32 %v2886_v6, %v541_v60  ;;  %v691_v53 = vmul.f32 %v2895_v14, %v673_v54 }
 0x268   :  { %v699_v54 = vadd.f32 %v691_v53, %v651_v50 }
 0x26a   :  { %v2926_v56 = vpop.permute.xlu1 %632  ;;  %v669_v4 = vpop.permute.xlu0 %668 }
 0x26b   :  { %v690_v26 = vmul.f32 %v2903_v21, %v669_v4  ;;  %v645_v23 = vmul.f32 %v2883_v5, %v2926_v56 }
 0x26f   :  { %v573_v58 = vpop.permute.xlu1 %572  ;;  %v549_v17 = vpop.permute.xlu0 %548 }
 0x270   :  { %v594_v10 = vmul.f32 %v2889_v8, %v573_v58  ;;  %v558_v24 = vmul.f32 %v2886_v6, %v549_v17 }
 0x272   :  { %v602_v18 = vadd.f32 %v594_v10, %v554_v13 }
 0x274   :  { %v621_v0 = vpop.permute.xlu1 %620  ;;  %v677_v30 = vpop.permute.xlu0 %676 }
 0x275   :  { %v642_v16 = vmul.f32 %v2898_v15, %v621_v0  ;;  %v692_v4 = vmul.f32 %v2903_v21, %v677_v30 }
 0x277   :  { %v650_v25 = vadd.f32 %v642_v16, %v602_v18 }
 0x279   :  { %v581_v61 = vpop.permute.xlu1 %580  ;;  %v698_v39 = vadd.f32 %v690_v26, %v650_v25 }
 0x27a   :  { %v596_v27 = vmul.f32 %v2889_v8, %v581_v61  ;;  %v557_v61 = vmul.f32 %v2878_v1, %v545_v57 }
 0x27c   :  { %v604_v46 = vadd.f32 %v596_v27, %v556_v33  ;;  %v605_v52 = vadd.f32 %v597_v37, %v557_v61 }
 0x27e   :  { %v629_v9 = vpop.permute.xlu1 %628 }
 0x27f   :  { %v644_v34 = vmul.f32 %v2898_v15, %v629_v9  ;;  %v681_v9 = vpop.permute.xlu0 %680 }
 0x280   :  { %v693_v33 = vmul.f32 %v2895_v14, %v681_v9 }
 0x281   :  { %v652_v59 = vadd.f32 %v644_v34, %v604_v46 }
 0x283   :  { %v589_v19 = vpop.permute.xlu1 %588  ;;  %v700_v16 = vadd.f32 %v692_v4, %v652_v59 }
 0x284   :  { %v598_v12 = vmul.f32 %v2889_v8, %v589_v19 }
 0x286   :  { %v606_v34 = vadd.f32 %v598_v12, %v558_v24 }
 0x288   :  { %v637_v35 = vpop.permute.xlu1 %636 }
 0x289   :  { %v646_v25 = vmul.f32 %v2898_v15, %v637_v35  ;;  %v653_v35 = vadd.f32 %v645_v23, %v605_v52 }
 0x28d   :  { %v685_v13 = vpop.permute.xlu1 %684 }
 0x29a   :  { %v850_v38 = vpop.f32.mrb[8].mxu0  ;;  %v896_v42 = vpop.f32.mrb[8].mxu1 }
 0x29b   :  { %v851_v40 = vadd.f32 %v850_v38, %v697_v32  ;;  %v2210_v43 = vpop.f32.mrb[9].mxu0  ;;  %v897_v47 = vadd.f32 %v896_v42, %v698_v39  ;;  %v2216_v48 = vpop.f32.mrb[9].mxu1  ;;  %v694_v38 = vmul.f32 %v2903_v21, %v685_v13 }
 0x29c   :  { %v853_v49 = vpop.f32.mrb[10].mxu0  ;;  %v899_v55 = vpop.f32.mrb[10].mxu1  ;;  %v701_v48 = vadd.f32 %v693_v33, %v653_v35 }
 0x29d   :  { %v1088_v51 = vmul.f32 0.17677669, %v851_v40  ;;  %v2211_v58 = vpop.f32.mrb[11].mxu0  ;;  %v1089_v0 = vmul.f32 0.17677669, %v897_v47  ;;  %v2217_v60 = vpop.f32.mrb[11].mxu1  ;;  %v654_v40 = vadd.f32 %v646_v25, %v606_v34 }
 0x29f   :  { %v2946_v2 = vadd.f32 %v2909_v31, %v1088_v51  ;;  %v2952_v11 = vadd.f32 %v2919_v44, %v1089_v0  ;;  %v702_v46 = vadd.f32 %v694_v38, %v654_v40 }
 0x2a1   :  { %v1109_v10 = vsel %vm1102_vm10, %v2946_v2, -inf  ;;  %v1112_v32 = vsel %vm1102_vm10, %v2952_v11, -inf }
 0x2a2   :  { %1110 = vmax.xlane.f32.xlu0 %v1109_v10  ;;  %v942_v57 = vpop.f32.mrb[12].mxu0 }
 0x2a3   :  { %v988_v18 = vpop.f32.mrb[12].mxu1  ;;  %v943_v20 = vadd.f32 %v942_v57, %v699_v54  ;;  %v2222_v22 = vpop.f32.mrb[13].mxu0 }
 0x2a4   :  { %v989_v26 = vadd.f32 %v988_v18, %v700_v16  ;;  %v2228_v27 = vpop.f32.mrb[13].mxu1  ;;  %v945_v28 = vpop.f32.mrb[14].mxu0 }
 0x2a5   :  { %v1090_v29 = vmul.f32 0.17677669, %v943_v20  ;;  %v991_v19 = vpop.f32.mrb[14].mxu1  ;;  %v2223_v30 = vpop.f32.mrb[15].mxu0 }
 0x2a6   :  { %v1091_v39 = vmul.f32 0.17677669, %v989_v26  ;;  %v2229_v56 = vpop.f32.mrb[15].mxu1  ;;  %1113 = vmax.xlane.f32.xlu0 %v1112_v32 }
 0x2a7   :  { %v1098_v17 = vadd.f32 %v2909_v31, %v1090_v29 }
 0x2a8   :  { %v1099_v42 = vadd.f32 %v2919_v44, %v1091_v39 }
 0x2a9   :  { %v1115_v43 = vsel %vm1102_vm10, %v1098_v17, -inf }
 0x2aa   :  { %v1118_v47 = vsel %vm1102_vm10, %v1099_v42, -inf  ;;  %1116 = vmax.xlane.f32.xlu1 %v1115_v43  ;;  %v1034_v50 = vpop.f32.mrb[16].mxu0 }
 0x2ab   :  { %v1080_v49 = vpop.f32.mrb[16].mxu1  ;;  %1119 = vmax.xlane.f32.xlu0 %v1118_v47  ;;  %v1035_v51 = vadd.f32 %v1034_v50, %v701_v48  ;;  %v2234_v55 = vpop.f32.mrb[17].mxu0 }
 0x2ac   :  { %v1081_v53 = vadd.f32 %v1080_v49, %v702_v46  ;;  %v2240_v58 = vpop.f32.mrb[17].mxu1  ;;  %v1037_v59 = vpop.f32.mrb[18].mxu0 }
 0x2ad   :  { %v1083_v0 = vpop.f32.mrb[18].mxu1  ;;  %v1092_v61 = vmul.f32 0.17677669, %v1035_v51  ;;  %v2235_v37 = vpop.f32.mrb[19].mxu0 }
 0x2ae   :  { %v1093_v60 = vmul.f32 0.17677669, %v1081_v53  ;;  %v2241_v4 = vpop.f32.mrb[19].mxu1 }
 0x2af   :  { %v1100_v10 = vadd.f32 %v2909_v31, %v1092_v61 }
 0x2b0   :  { %v1101_v9 = vadd.f32 %v2919_v44, %v1093_v60 }
 0x2b1   :  { %v1121_v12 = vsel %vm1102_vm10, %v1100_v10, -inf }
 0x2b2   :  { %v1124_v54 = vsel %vm1102_vm10, %v1101_v9, -inf  ;;  %1122 = vmax.xlane.f32.xlu1 %v1121_v12 }
 0x2b3   :  { %1125 = vmax.xlane.f32.xlu0 %v1124_v54 }
 0x2b6   :  { %v1105_v13 = vpop.xlane.xlu0 %1104 }
 0x2b7   :  { %v1127_v16 = vsub.f32 %v2912_v41, %v1105_v13 }
 0x2b9   :  { %v1135_v57 = vmul.f32 1.442695, %v1127_v16 }
 0x2bb   :  { %2489 = vpow2.f32 %v1135_v57 }
 0x2bf   :  { %v1108_v52 = vpop.xlane.xlu1 %1107 }
 0x2c0   :  { %v1128_v18 = vsub.f32 %v2922_v45, %v1108_v52 }
 0x2c2   :  { %v1137_v20 = vmul.f32 1.442695, %v1128_v18 }
 0x2c4   :  { %2491 = vpow2.f32 %v1137_v20 }
 0x2c5   :  { %v2490_v22 = vpop.eup %2489 }
 0x2c6   :  { %v1151_v44 = vsel %vm1102_vm10, %v2490_v22, 0.0 }
 0x2c7   :  { %1152 = vadd.xlane.f32.xlu1 %v1151_v44 }
 0x2ce   :  { %v2492_v31 = vpop.eup %2491 }
 0x2cf   :  { %v1154_v23 = vsel %vm1102_vm10, %v2492_v31, 0.0 }
 0x2d0   :  { %1155 = vadd.xlane.f32.xlu0 %v1154_v23 }
 0x32f   :  { %v1111_v24 = vpop.xlane.xlu0 %1110 }
 0x330   :  { %v1129_v25 = vsub.f32 %v2946_v2, %v1111_v24  ;;  %v1354_v24 = vld [vmem:[%s3266_s5] sm:$0xf] }
 0x331   :  { %2242 = vmatprep.subr.msk.mxu1 %vm1380_vm11, %v1354_v24 }
 0x332   :  { %v1139_v26 = vmul.f32 1.442695, %v1129_v25  ;;  %2243 = vmatpush3.msk.msra.mxu1 %vm1380_vm11, %v1354_v24 }
 0x333   :  { %v1114_v41 = vpop.xlane.xlu0 %1113  ;;  %2256 = vmatprep.subr.bf16.mxu1 %v2656_v36 }
 0x334   :  { %2493 = vpow2.f32 %v1139_v26  ;;  %v1130_v27 = vsub.f32 %v2952_v11, %v1114_v41 }
 0x336   :  { %v1141_v28 = vmul.f32 1.442695, %v1130_v27 }
 0x337   :  { %v1117_v45 = vpop.xlane.xlu1 %1116 }
 0x338   :  { %2495 = vpow2.f32 %v1141_v28  ;;  %v1120_v29 = vpop.xlane.xlu0 %1119  ;;  %v1131_v19 = vsub.f32 %v1098_v17, %v1117_v45 }
 0x339   :  { %v1132_v30 = vsub.f32 %v1099_v42, %v1120_v29 }
 0x33a   :  { %v1143_v32 = vmul.f32 1.442695, %v1131_v19 }
 0x33b   :  { %v1145_v33 = vmul.f32 1.442695, %v1132_v30 }
 0x33c   :  { %2497 = vpow2.f32 %v1143_v32 }
 0x33d   :  { %2499 = vpow2.f32 %v1145_v33 }
 0x33e   :  { %v2977_v34 = vpop.eup %2493 }
 0x33f   :  { %v1157_v2 = vsel %vm1102_vm10, %v2977_v34, 0.0  ;;  %v1123_v39 = vpop.xlane.xlu1 %1122 }
 0x340   :  { %v1126_v38 = vpop.xlane.xlu0 %1125  ;;  %1158 = vadd.xlane.f32.xlu1 %v1157_v2  ;;  %v1133_v11 = vsub.f32 %v1100_v10, %v1123_v39 }
 0x341   :  { %v1134_v56 = vsub.f32 %v1101_v9, %v1126_v38 }
 0x342   :  { %v2981_v35 = vpop.eup %2495  ;;  %v1147_v43 = vmul.f32 1.442695, %v1133_v11 }
 0x343   :  { %v1149_v40 = vmul.f32 1.442695, %v1134_v56  ;;  %v1160_v17 = vsel %vm1102_vm10, %v2981_v35, 0.0 }
 0x344   :  { %1161 = vadd.xlane.f32.xlu0 %v1160_v17 }
 0x345   :  { %2501 = vpow2.f32 %v1149_v40 }
 0x346   :  { %v2985_v42 = vpop.eup %2497  ;;  %2503 = vpow2.f32 %v1147_v43 }
 0x347   :  { %v2987_v46 = vpop.eup %2499  ;;  %v1163_v47 = vsel %vm1102_vm10, %v2985_v42, 0.0 }
 0x348   :  { %v1166_v48 = vsel %vm1102_vm10, %v2987_v46, 0.0  ;;  %1164 = vadd.xlane.f32.xlu1 %v1163_v47 }
 0x349   :  { %1167 = vadd.xlane.f32.xlu0 %v1166_v48 }
 0x34f   :  { %v2993_v49 = vpop.eup %2501 }
 0x350   :  { %v2995_v50 = vpop.eup %2503  ;;  %v1172_v53 = vsel %vm1102_vm10, %v2993_v49, 0.0 }
 0x351   :  { %1173 = vadd.xlane.f32.xlu0 %v1172_v53  ;;  %v1169_v51 = vsel %vm1102_vm10, %v2995_v50, 0.0 }
 0x352   :  { %1170 = vadd.xlane.f32.xlu1 %v1169_v51 }
 0x354   :  { %v1153_v55 = vpop.xlane.xlu1 %1152 }
 0x355   :  { %2505 = vrcp.f32 %v1153_v55 }
 0x35d   :  { %v1156_v58 = vpop.xlane.xlu0 %1155 }
 0x35e   :  { %2507 = vrcp.f32 %v1156_v58 }
 0x35f   :  { %v2506_v59 = vpop.eup %2505 }
 0x360   :  { %v3001_v0 = vmul.f32 %v2506_v59, %v2490_v22 }
 0x362   :  { %v1231_v60 = vmul.f32 %v2875_v62, %v3001_v0  ;;  %v1199_v61 = vmul.f32 %v2878_v1, %v3001_v0  ;;  %v1263_v9 = vmul.f32 %v2883_v5, %v3001_v0  ;;  %v1295_v54 = vmul.f32 %v2895_v14, %v3001_v0 }
 0x364   :  { %v1239_v37 = vsel %vm1102_vm10, %v1231_v60, 0.0  ;;  %v1207_v4 = vsel %vm1102_vm10, %v1199_v61, 0.0  ;;  %v1271_v10 = vsel %vm1102_vm10, %v1263_v9, 0.0  ;;  %v1303_v57 = vsel %vm1102_vm10, %v1295_v54, 0.0 }
 0x365   :  { %1240 = vadd.xlane.f32.xlu0 %v1239_v37  ;;  %1208 = vadd.xlane.f32.xlu1 %v1207_v4 }
 0x368   :  { %v2508_v12 = vpop.eup %2507 }
 0x369   :  { %1272 = vadd.xlane.f32.xlu1 %v1271_v10  ;;  %v3014_v13 = vmul.f32 %v2508_v12, %v2492_v31 }
 0x36b   :  { %v1232_v16 = vmul.f32 %v2889_v8, %v3014_v13  ;;  %v1200_v52 = vmul.f32 %v2886_v6, %v3014_v13  ;;  %v1264_v20 = vmul.f32 %v2898_v15, %v3014_v13  ;;  %v1296_v31 = vmul.f32 %v2903_v21, %v3014_v13 }
 0x36d   :  { %1304 = vadd.xlane.f32.xlu1 %v1303_v57  ;;  %v1242_v18 = vsel %vm1102_vm10, %v1232_v16, 0.0  ;;  %v1210_v22 = vsel %vm1102_vm10, %v1200_v52, 0.0  ;;  %v1274_v44 = vsel %vm1102_vm10, %v1264_v20, 0.0  ;;  %v1306_v23 = vsel %vm1102_vm10, %v1296_v31, 0.0 }
 0x36e   :  { %1243 = vadd.xlane.f32.xlu0 %v1242_v18 }
 0x371   :  { %1211 = vadd.xlane.f32.xlu1 %v1210_v22 }
 0x372   :  { %1275 = vadd.xlane.f32.xlu0 %v1274_v44 }
 0x376   :  { %1307 = vadd.xlane.f32.xlu0 %v1306_v23 }
 0x3cd   :  { %v1159_v25 = vpop.xlane.xlu1 %1158 }
 0x3ce   :  { %2509 = vrcp.f32 %v1159_v25 }
 0x3d1   :  { %v1162_v26 = vpop.xlane.xlu0 %1161 }
 0x3d2   :  { %2511 = vrcp.f32 %v1162_v26 }
 0x3d5   :  { %v1165_v41 = vpop.xlane.xlu1 %1164 }
 0x3d6   :  { %2513 = vrcp.f32 %v1165_v41  ;;  %v1168_v45 = vpop.xlane.xlu0 %1167 }
 0x3d7   :  { %2515 = vrcp.f32 %v1168_v45 }
 0x3d8   :  { %v2510_v27 = vpop.eup %2509 }
 0x3d9   :  { %v3036_v28 = vmul.f32 %v2510_v27, %v2977_v34 }
 0x3db   :  { %v1233_v29 = vmul.f32 %v2875_v62, %v3036_v28  ;;  %v1201_v19 = vmul.f32 %v2878_v1, %v3036_v28  ;;  %v1265_v34 = vmul.f32 %v2883_v5, %v3036_v28 }
 0x3dc   :  { %v2512_v30 = vpop.eup %2511 }
 0x3dd   :  { %v3043_v32 = vmul.f32 %v2512_v30, %v2981_v35  ;;  %v1245_v33 = vsel %vm1102_vm10, %v1233_v29, 0.0  ;;  %v1213_v2 = vsel %vm1102_vm10, %v1201_v19, 0.0  ;;  %v1277_v56 = vsel %vm1102_vm10, %v1265_v34, 0.0 }
 0x3de   :  { %1246 = vadd.xlane.f32.xlu0 %v1245_v33  ;;  %1214 = vadd.xlane.f32.xlu1 %v1213_v2  ;;  %v1297_v35 = vmul.f32 %v2895_v14, %v3036_v28  ;;  %v1174_v60 = vpop.xlane.xlu0 %1173 }
 0x3df   :  { %v1234_v38 = vmul.f32 %v2889_v8, %v3043_v32  ;;  %v1266_v11 = vmul.f32 %v2898_v15, %v3043_v32  ;;  %v1298_v43 = vmul.f32 %v2903_v21, %v3043_v32  ;;  %v1171_v47 = vpop.xlane.xlu1 %1170  ;;  %v1202_v51 = vmul.f32 %v2886_v6, %v3043_v32 }
 0x3e0   :  { %v2514_v40 = vpop.eup %2513  ;;  %v1309_v53 = vsel %vm1102_vm10, %v1297_v35, 0.0  ;;  %2517 = vrcp.f32 %v1171_v47 }
 0x3e1   :  { %v1248_v39 = vsel %vm1102_vm10, %v1234_v38, 0.0  ;;  %v3060_v17 = vmul.f32 %v2514_v40, %v2985_v42  ;;  %v1280_v48 = vsel %vm1102_vm10, %v1266_v11, 0.0  ;;  %v2516_v55 = vpop.eup %2515  ;;  %v1312_v58 = vsel %vm1102_vm10, %v1298_v43, 0.0 }
 0x3e2   :  { %1249 = vadd.xlane.f32.xlu0 %v1248_v39  ;;  %1278 = vadd.xlane.f32.xlu1 %v1277_v56  ;;  %v3068_v59 = vmul.f32 %v2516_v55, %v2987_v46  ;;  %v1216_v42 = vsel %vm1102_vm10, %v1202_v51, 0.0  ;;  %2519 = vrcp.f32 %v1174_v60  ;;  %v471_v43 = vpack.c.bf16 %v2802_v63, %v2802_v63 }
 0x3e3   :  { %v1235_v61 = vmul.f32 %v2875_v62, %v3060_v17  ;;  %v1203_v37 = vmul.f32 %v2878_v1, %v3060_v17  ;;  %v1267_v10 = vmul.f32 %v2883_v5, %v3060_v17  ;;  %v1299_v52 = vmul.f32 %v2895_v14, %v3060_v17 }
 0x3e4   :  { %v1236_v46 = vmul.f32 %v2889_v8, %v3068_v59  ;;  %v1268_v57 = vmul.f32 %v2898_v15, %v3068_v59  ;;  %v1300_v20 = vmul.f32 %v2903_v21, %v3068_v59  ;;  %v1204_v22 = vmul.f32 %v2886_v6, %v3068_v59 }
 0x3e5   :  { %v1251_v4 = vsel %vm1102_vm10, %v1235_v61, 0.0  ;;  %v1219_v9 = vsel %vm1102_vm10, %v1203_v37, 0.0  ;;  %v1283_v12 = vsel %vm1102_vm10, %v1267_v10, 0.0  ;;  %v1315_v24 = vsel %vm1102_vm10, %v1299_v52, 0.0 }
 0x3e6   :  { %1281 = vadd.xlane.f32.xlu0 %v1280_v48  ;;  %1310 = vadd.xlane.f32.xlu1 %v1309_v53  ;;  %v1254_v54 = vsel %vm1102_vm10, %v1236_v46, 0.0  ;;  %v1286_v23 = vsel %vm1102_vm10, %v1268_v57, 0.0  ;;  %v1318_v27 = vsel %vm1102_vm10, %v1300_v20, 0.0  ;;  %v1222_v45 = vsel %vm1102_vm10, %v1204_v22, 0.0 }
 0x3e7   :  { %v1493_v51 = vsel %vm1380_vm11, %v471_v43, 0 }
 0x3ea   :  { %1313 = vadd.xlane.f32.xlu0 %v1312_v58  ;;  %1217 = vadd.xlane.f32.xlu1 %v1216_v42  ;;  %v2518_v18 = vpop.eup %2517 }
 0x3eb   :  { %v3092_v44 = vmul.f32 %v2518_v18, %v2995_v50 }
 0x3ec   :  { %v2520_v26 = vpop.eup %2519 }
 0x3ed   :  { %v3100_v50 = vmul.f32 %v2520_v26, %v2993_v49  ;;  %v1237_v30 = vmul.f32 %v2875_v62, %v3092_v44  ;;  %v1205_v33 = vmul.f32 %v2878_v1, %v3092_v44  ;;  %v1269_v62 = vmul.f32 %v2883_v5, %v3092_v44 }
 0x3ee   :  { %1252 = vadd.xlane.f32.xlu0 %v1251_v4  ;;  %1220 = vadd.xlane.f32.xlu1 %v1219_v9  ;;  %v1301_v5 = vmul.f32 %v2895_v14, %v3092_v44 }
 0x3ef   :  { %v1257_v38 = vsel %vm1102_vm10, %v1237_v30, 0.0  ;;  %v1225_v49 = vsel %vm1102_vm10, %v1205_v33, 0.0  ;;  %v1238_v56 = vmul.f32 %v2889_v8, %v3100_v50  ;;  %v1289_v40 = vsel %vm1102_vm10, %v1269_v62, 0.0 }
 0x3f0   :  { %v1270_v47 = vmul.f32 %v2898_v15, %v3100_v50  ;;  %v1302_v63 = vmul.f32 %v2903_v21, %v3100_v50  ;;  %v1321_v15 = vsel %vm1102_vm10, %v1301_v5, 0.0  ;;  %v1206_v14 = vmul.f32 %v2886_v6, %v3100_v50 }
 0x3f1   :  { %v1260_v35 = vsel %vm1102_vm10, %v1238_v56, 0.0 }
 0x3f2   :  { %v1209_v16 = vpop.xlane.xlu1 %1208  ;;  %1255 = vadd.xlane.f32.xlu0 %v1254_v54  ;;  %1284 = vadd.xlane.f32.xlu1 %v1283_v12  ;;  %v1241_v31 = vpop.xlane.xlu0 %1240  ;;  %v1292_v55 = vsel %vm1102_vm10, %v1270_v47, 0.0  ;;  %v1324_v58 = vsel %vm1102_vm10, %v1302_v63, 0.0  ;;  %v1228_v60 = vsel %vm1102_vm10, %v1206_v14, 0.0 }
 0x3f3   :  { %v1328_v41 = vsel %vm1327_vm12, %v1209_v16, %v1241_v31 }
 0x3f6   :  { %v1273_v25 = vpop.xlane.xlu1 %1272  ;;  %1287 = vadd.xlane.f32.xlu0 %v1286_v23  ;;  %1316 = vadd.xlane.f32.xlu1 %v1315_v24 }
 0x3f7   :  { %v1337_v29 = vsel %vm1336_vm13, %v1328_v41, %v1273_v25 }
 0x3fa   :  { %v1305_v19 = vpop.xlane.xlu1 %1304  ;;  %1319 = vadd.xlane.f32.xlu0 %v1318_v27  ;;  %1223 = vadd.xlane.f32.xlu1 %v1222_v45 }
 0x3fb   :  { %v1346_v2 = vsel %vm1345_vm14, %v1337_v29, %v1305_v19  ;;  %v1244_v34 = vpop.xlane.xlu0 %1243 }
 0x3fc   :  { %2244 = vmatprep.mubr.msk.f32.mxu1 %vm1355_vm15, %v1346_v2 }
 0x3fe   :  { %v1212_v39 = vpop.xlane.xlu1 %1211  ;;  %1258 = vadd.xlane.f32.xlu0 %v1257_v38  ;;  %1226 = vadd.xlane.f32.xlu1 %v1225_v49 }
 0x3ff   :  { %v1276_v1 = vpop.xlane.xlu0 %1275  ;;  %v1329_v11 = vsel %vm1327_vm12, %v1212_v39, %v1244_v34 }
 0x400   :  { %v1338_v48 = vsel %vm1336_vm13, %v1329_v11, %v1276_v1 }
 0x402   :  { %1261 = vadd.xlane.f32.xlu0 %v1260_v35  ;;  %1290 = vadd.xlane.f32.xlu1 %v1289_v40 }
 0x403   :  { %v1308_v8 = vpop.xlane.xlu0 %1307 }
 0x404   :  { %v1347_v53 = vsel %vm1345_vm14, %v1338_v48, %v1308_v8  ;;  %v472_v8 = vpack.c.bf16 %v2805_v3, %v2805_v3 }
 0x405   :  { %2245 = vmatmul.mubr.msk.f32.vlgmr.msra.gmra.mrb[20].mxu1 %vm1355_vm15, %v1347_v53 }
 0x406   :  { %2257 = vmatpush3.bf16.msra.mxu1 %v1493_v51  ;;  %1293 = vadd.xlane.f32.xlu0 %v1292_v55  ;;  %v1191_v51 = vpack.c.bf16 %v3001_v0, %v3001_v0  ;;  %v1193_v0 = vpack.c.bf16 %v3036_v28, %v3036_v28 }
 0x407   :  { %1322 = vadd.xlane.f32.xlu1 %v1321_v15  ;;  %2262 = vmatprep.subr.bf16.mxu1 %v2656_v36  ;;  %v1539_v15 = vsel %vm1380_vm11, %v472_v8, 0 }
 0x40a   :  { %1325 = vadd.xlane.f32.xlu0 %v1324_v58 }
 0x40b   :  { %1229 = vadd.xlane.f32.xlu1 %v1228_v60 }
 0x41c   :  { %2404 = vrot.lane.b32.xlu1 %v2812_v7, %s2659_s4 }
 0x420   :  { %2414 = vrot.lane.b32.xlu1 %v2812_v7, %s2660_s29  ;;  %2409 = vrot.lane.b32.xlu0 %v2812_v7, %s2653_s3 }
 0x46b   :  { %v1247_v21 = vpop.xlane.xlu0 %1246  ;;  %v1215_v6 = vpop.xlane.xlu1 %1214 }
 0x46c   :  { %v1330_v37 = vsel %vm1327_vm12, %v1215_v6, %v1247_v21 }
 0x46f   :  { %v1250_v42 = vpop.xlane.xlu0 %1249  ;;  %v1279_v61 = vpop.xlane.xlu1 %1278 }
 0x470   :  { %v1339_v4 = vsel %vm1336_vm13, %v1330_v37, %v1279_v61 }
 0x473   :  { %v1282_v9 = vpop.xlane.xlu0 %1281  ;;  %v1311_v46 = vpop.xlane.xlu1 %1310 }
 0x474   :  { %v1348_v10 = vsel %vm1345_vm14, %v1339_v4, %v1311_v46  ;;  %v1194_v46 = vpack.c.bf16 %v3043_v32, %v3043_v32 }
 0x475   :  { %2247 = vmatprep.mubr.msk.f32.mxu1 %vm1355_vm15, %v1348_v10 }
 0x477   :  { %v1314_v54 = vpop.xlane.xlu0 %1313  ;;  %v1218_v12 = vpop.xlane.xlu1 %1217 }
 0x478   :  { %v1331_v16 = vsel %vm1327_vm12, %v1218_v12, %v1250_v42  ;;  %v1192_v42 = vpack.c.bf16 %v3014_v13, %v3014_v13  ;;  %v1195_v13 = vpack.c.bf16 %v3060_v17, %v3060_v17  ;;  %v1197_v17 = vpack.c.bf16 %v3092_v44, %v3092_v44 }
 0x479   :  { %v1340_v7 = vsel %vm1336_vm13, %v1331_v16, %v1282_v9  ;;  %v1196_v12 = vpack.c.bf16 %v3068_v59, %v3068_v59  ;;  %v1198_v44 = vpack.c.bf16 %v3100_v50, %v3100_v50  ;;  %v2482_v59 = vld [vmem:[#allocation8 + $0x8] sm:$0xff]  }
 0x47a   :  { %v1349_v57 = vsel %vm1345_vm14, %v1340_v7, %v1314_v54 }
 0x47b   :  { %v1253_v52 = vpop.xlane.xlu0 %1252  ;;  %2248 = vmatmul.mubr.msk.f32.gmra.mrb[22].mxu1 %vm1355_vm15, %v1349_v57  ;;  %v1221_v18 = vpop.xlane.xlu1 %1220 }
 0x47c   :  { %v1332_v31 = vsel %vm1327_vm12, %v1221_v18, %v1253_v52  ;;  %v2481_v52 = vld [vmem:[#allocation8] sm:$0xff]   ;;  %v2483_v18 = vld [vmem:[#allocation8 + $0x10] sm:$0xff]  }
 0x47f   :  { %v1256_v20 = vpop.xlane.xlu0 %1255  ;;  %v1285_v22 = vpop.xlane.xlu1 %1284 }
 0x480   :  { %v1341_v23 = vsel %vm1336_vm13, %v1332_v31, %v1285_v22 }
 0x483   :  { %v1288_v24 = vpop.xlane.xlu0 %1287  ;;  %v1317_v25 = vpop.xlane.xlu1 %1316 }
 0x484   :  { %v1350_v26 = vsel %vm1345_vm14, %v1341_v23, %v1317_v25 }
 0x485   :  { %2250 = vmatprep.mubr.msk.f32.mxu1 %vm1355_vm15, %v1350_v26 }
 0x487   :  { %v1320_v41 = vpop.xlane.xlu0 %1319  ;;  %v1224_v27 = vpop.xlane.xlu1 %1223 }
 0x488   :  { %v1333_v45 = vsel %vm1327_vm12, %v1224_v27, %v1256_v20 }
 0x489   :  { %v1342_v29 = vsel %vm1336_vm13, %v1333_v45, %v1288_v24 }
 0x48a   :  { %v1351_v19 = vsel %vm1345_vm14, %v1342_v29, %v1320_v41 }
 0x48b   :  { %v1259_v30 = vpop.xlane.xlu0 %1258  ;;  %2251 = vmatmul.mubr.msk.f32.gmra.mrb[24].mxu1 %vm1355_vm15, %v1351_v19  ;;  %v1227_v33 = vpop.xlane.xlu1 %1226 }
 0x48c   :  { %v1334_v38 = vsel %vm1327_vm12, %v1227_v33, %v1259_v30 }
 0x48f   :  { %v1262_v2 = vpop.xlane.xlu0 %1261  ;;  %v1291_v34 = vpop.xlane.xlu1 %1290 }
 0x490   :  { %v1343_v39 = vsel %vm1336_vm13, %v1334_v38, %v1291_v34 }
 0x493   :  { %v1294_v49 = vpop.xlane.xlu0 %1293 }
 0x494   :  { %v1323_v56 = vpop.xlane.xlu1 %1322 }
 0x495   :  { %v1352_v62 = vsel %vm1345_vm14, %v1343_v39, %v1323_v56  ;;  %v2484_v56 = vld [vmem:[#allocation8 + $0x18] sm:$0xff]  }
 0x496   :  { %2253 = vmatprep.mubr.msk.f32.mxu1 %vm1355_vm15, %v1352_v62 }
 0x497   :  { %v1326_v1 = vpop.xlane.xlu0 %1325 }
 0x498   :  { %v1230_v11 = vpop.xlane.xlu1 %1229 }
 0x499   :  { %v1335_v35 = vsel %vm1327_vm12, %v1230_v11, %v1262_v2 }
 0x49a   :  { %v1344_v40 = vsel %vm1336_vm13, %v1335_v35, %v1294_v49 }
 0x49b   :  { %v2410_v43 = vpop.permute.xlu0 %2409  ;;  %v1353_v47 = vsel %vm1345_vm14, %v1344_v40, %v1326_v1  ;;  %v2485_v1 = vld [vmem:[#allocation8 + $0x20] sm:$0xff]  }
 0x49c   :  { %2254 = vmatmul.mubr.msk.f32.gmra.mrb[26].mxu1 %vm1355_vm15, %v1353_v47  ;;  %v2405_v5 = vpop.permute.xlu1 %2404  ;;  %v2411_v48 = vunpack.i.l.bf16 %v2410_v43  ;;  %v2412_v61 = vunpack.i.h.bf16 %v2410_v43 }
 0x49d   :  { %v2406_v53 = vunpack.i.l.bf16 %v2405_v5  ;;  %2258 = vmatprep.mubr.msk.bf16.mxu1 %vm2657_vm0, %v2656_v36  ;;  %v2407_v63 = vunpack.i.h.bf16 %v2405_v5 }
 0x49e   :  { %v475_v14 = vpack.c.bf16 %v2411_v48, %v2411_v48  ;;  %v476_v4 = vpack.c.bf16 %v2412_v61, %v2412_v61 }
 0x49f   :  { %v473_v55 = vpack.c.bf16 %v2406_v53, %v2406_v53  ;;  %v474_v60 = vpack.c.bf16 %v2407_v63, %v2407_v63 }
 0x4a0   :  { %2259 = vmatmul.mubr.msk.bf16.vlgmr.msra.gmra.mrb[28].mxu1 %vm1102_vm10, %v1191_v51  ;;  %v2415_v3 = vpop.permute.xlu1 %2414  ;;  %v1677_v6 = vsel %vm1380_vm11, %v475_v14, 0  ;;  %v1723_v54 = vsel %vm1380_vm11, %v476_v4, 0  ;;  %v2486_v51 = vld [vmem:[#allocation8 + $0x28] sm:$0xff]  }
 0x4a1   :  { %2263 = vmatpush3.bf16.msra.mxu1 %v1539_v15  ;;  %v1585_v58 = vsel %vm1380_vm11, %v473_v55, 0  ;;  %2264 = vmatprep.mubr.msk.bf16.mxu1 %vm2657_vm0, %v2656_v36  ;;  %v2416_v21 = vunpack.i.l.bf16 %v2415_v3  ;;  %v1631_v28 = vsel %vm1380_vm11, %v474_v60, 0  ;;  %v2417_v10 = vunpack.i.h.bf16 %v2415_v3  ;;  %v2487_v15 = vld [vmem:[#allocation8 + $0x30] sm:$0xff]  }
 0x4a2   :  { %2269 = vmatpush3.bf16.msra.mxu0 %v1585_v58  ;;  %2274 = vmatprep.subr.bf16.mxu1 %v2656_v36 }
 0x4a3   :  { %2280 = vmatprep.subr.bf16.mxu0 %v2656_v36  ;;  %v477_v37 = vpack.c.bf16 %v2416_v21, %v2416_v21  ;;  %v478_v32 = vpack.c.bf16 %v2417_v10, %v2417_v10 }
 0x4a5   :  { %2271 = vmatmul.mubr.msk.bf16.vlgmr.msra.gmra.mrb[20].mxu0 %vm1102_vm10, %v1193_v0  ;;  %v1769_v9 = vsel %vm1380_vm11, %v477_v37, 0  ;;  %v1815_v16 = vsel %vm1380_vm11, %v478_v32, 0 }
 0x4a6   :  { %2281 = vmatpush3.bf16.msra.mxu0 %v1677_v6  ;;  %2282 = vmatprep.mubr.msk.bf16.mxu0 %vm2657_vm0, %v2656_v36 }
 0x4a7   :  { %2292 = vmatprep.subr.bf16.mxu0 %v2656_v36 }
 0x4a8   :  { %2265 = vmatmul.mubr.msk.bf16.vlgmr.msra.gmra.mrb[32].mxu1 %vm1102_vm10, %v1192_v42 }
 0x4a9   :  { %2275 = vmatpush3.bf16.msra.mxu1 %v1631_v28  ;;  %2276 = vmatprep.mubr.msk.bf16.mxu1 %vm2657_vm0, %v2656_v36 }
 0x4aa   :  { %2286 = vmatprep.subr.bf16.mxu1 %v2656_v36 }
 0x4ad   :  { %2283 = vmatmul.mubr.msk.bf16.vlgmr.msra.gmra.mrb[24].mxu0 %vm1102_vm10, %v1195_v13  ;;  %v2488_v13 = vld [vmem:[#allocation8 + $0x38] sm:$0xff]  }
 0x4ae   :  { %2293 = vmatpush3.bf16.msra.mxu0 %v1769_v9  ;;  %2294 = vmatprep.mubr.msk.bf16.mxu0 %vm2657_vm0, %v2656_v36 }
 0x4af   :  { %2304 = vmatprep.subr.bf16.mxu0 %v2656_v36 }
 0x4b0   :  { %2277 = vmatmul.mubr.msk.bf16.vlgmr.msra.gmra.mrb[36].mxu1 %vm1102_vm10, %v1194_v46 }
 0x4b1   :  { %2287 = vmatpush3.bf16.msra.mxu1 %v1723_v54  ;;  %2288 = vmatprep.mubr.msk.bf16.mxu1 %vm2657_vm0, %v2656_v36 }
 0x4b2   :  { %2298 = vmatprep.subr.bf16.mxu1 %v2656_v36 }
 0x4b5   :  { %2295 = vmatmul.mubr.msk.bf16.vlgmr.msra.gmra.mrb[28].mxu0 %vm1102_vm10, %v1197_v17 }
 0x4b6   :  { %2320 = vmatprep.mubr.msk.bf16.mxu0 %vm2657_vm0, %v2656_v36  ;;  %2305 = vmatpush3.bf16.msra.mxu0 %v2481_v52 }
 0x4b7   :  { %2306 = vmatprep.subr.bf16.mxu0 %v2656_v36 }
 0x4b8   :  { %2289 = vmatmul.mubr.msk.bf16.vlgmr.msra.gmra.mrb[40].mxu1 %vm1102_vm10, %v1196_v12 }
 0x4b9   :  { %2299 = vmatpush3.bf16.msra.mxu1 %v1815_v16  ;;  %2300 = vmatprep.mubr.msk.bf16.mxu1 %vm2657_vm0, %v2656_v36  ;;  %vm1883_vm0 = vcmask 523264  }
 0x4ba   :  { %2307 = vmatpush3.bf16.msra.mxu0 %v2482_v59 }
 0x4bb   :  { %2308 = vmatprep.subr.bf16.mxu0 %v2656_v36 }
 0x4be   :  { %2309 = vmatpush3.bf16.msra.mxu0 %v2483_v18 }
 0x4bf   :  { %2310 = vmatprep.subr.bf16.mxu0 %v2656_v36 }
 0x4c0   :  { %2301 = vmatmul.mubr.msk.bf16.vlgmr.msra.gmra.mrb[44].mxu1 %vm1102_vm10, %v1198_v44 }
 0x4c2   :  { %2311 = vmatpush3.bf16.msra.mxu0 %v2484_v56 }
 0x4c3   :  { %2312 = vmatprep.subr.bf16.mxu0 %v2656_v36 }
 0x4c6   :  { %2313 = vmatpush3.bf16.msra.mxu0 %v2485_v1 }
 0x4c7   :  { %2314 = vmatprep.subr.bf16.mxu0 %v2656_v36 }
 0x4ca   :  { %2315 = vmatpush3.bf16.msra.mxu0 %v2486_v51  ;;  %v2142_v51 = vld [vmem:[%s3269_s8] ss:$0 sm:$0xff] }
 0x4cb   :  { %2316 = vmatprep.subr.bf16.mxu0 %v2656_v36 }
 0x4ce   :  { %2317 = vmatpush3.bf16.msra.mxu0 %v2487_v15 }
 0x4cf   :  { %2318 = vmatprep.subr.bf16.mxu0 %v2656_v36 }
 0x4d2   :  { %2319 = vmatpush3.bf16.msra.mxu0 %v2488_v13 }
 0x4d8   :  { %v2246_v7 = vpop.f32.mrb[20].mxu1 }
 0x4d9   :  { %v1450_v57 = vpop.f32.mrb[21].mxu1 }
 0x54e   :  { %v2249_v20 = vpop.f32.mrb[22].mxu1 }
 0x54f   :  { %v1460_v22 = vpop.f32.mrb[23].mxu1 }
 0x55e   :  { %v2252_v31 = vpop.f32.mrb[24].mxu1 }
 0x55f   :  { %v1470_v50 = vpop.f32.mrb[25].mxu1 }
 0x56f   :  { %v2255_v23 = vpop.f32.mrb[26].mxu1 }
 0x570   :  { %v1480_v24 = vpop.f32.mrb[27].mxu1 }
 0x573   :  { %v1529_v25 = vpop.f32.mrb[28].mxu1 }
 0x574   :  { %v3225_v26 = vadd.f32 %v1529_v25, %v1450_v57  ;;  %v2260_v41 = vpop.f32.mrb[29].mxu1  ;;  %v2133_v25 = vld [vmem:[%s3268_s7] ss:$0 sm:$0xff] }
 0x575   :  { %v1532_v27 = vpop.f32.mrb[30].mxu1 }
 0x576   :  { %v2261_v45 = vpop.f32.mrb[31].mxu1 }
 0x578   :  { %v1621_v29 = vpop.f32.mrb[20].mxu0 }
 0x579   :  { %v1622_v19 = vadd.f32 %v1621_v29, %v1460_v22  ;;  %v2272_v30 = vpop.f32.mrb[21].mxu0 }
 0x57a   :  { %v1624_v33 = vpop.f32.mrb[22].mxu0 }
 0x57b   :  { %v1575_v2 = vpop.f32.mrb[32].mxu1  ;;  %v2273_v34 = vpop.f32.mrb[23].mxu0  ;;  %v2525_v33 = vld [vmem:[#allocation2] sm:$0xff] }
 0x57c   :  { %v1576_v38 = vadd.f32 %v2246_v7, %v1575_v2  ;;  %v2266_v49 = vpop.f32.mrb[33].mxu1  ;;  %v2526_v2 = vld [vmem:[#allocation2 + $0x8] sm:$0xff] }
 0x57d   :  { %v1578_v39 = vpop.f32.mrb[34].mxu1 }
 0x57e   :  { %v2267_v62 = vpop.f32.mrb[35].mxu1 }
 0x580   :  { %v1713_v11 = vpop.f32.mrb[24].mxu0 }
 0x581   :  { %v1714_v35 = vadd.f32 %v1713_v11, %v1470_v50  ;;  %v2284_v40 = vpop.f32.mrb[25].mxu0 }
 0x582   :  { %v1716_v43 = vpop.f32.mrb[26].mxu0 }
 0x583   :  { %v1667_v47 = vpop.f32.mrb[36].mxu1  ;;  %v2285_v5 = vpop.f32.mrb[27].mxu0 }
 0x584   :  { %v1668_v8 = vadd.f32 %v2249_v20, %v1667_v47  ;;  %v2278_v48 = vpop.f32.mrb[37].mxu1 }
 0x585   :  { %v1670_v53 = vpop.f32.mrb[38].mxu1 }
 0x586   :  { %v2418_v55 = vpack.i.bf16 %v1668_v8, %v1622_v19  ;;  %v2279_v63 = vpop.f32.mrb[39].mxu1 }
 0x587   :  { %v2143_v63 = vld [vmem:[%s3270_s9] ss:$0 sm:$0xff] }
 0x588   :  { %2419 = vrot.lane.b32.xlu1 %v2418_v55, %s2660_s29  ;;  %v1805_v14 = vpop.f32.mrb[28].mxu0 }
 0x589   :  { %v1806_v58 = vadd.f32 %v1805_v14, %v1480_v24  ;;  %v2296_v3 = vpop.f32.mrb[29].mxu0 }
 0x58a   :  { %v1808_v0 = vpop.f32.mrb[30].mxu0 }
 0x58b   :  { %v1759_v60 = vpop.f32.mrb[40].mxu1  ;;  %v2297_v21 = vpop.f32.mrb[31].mxu0 }
 0x58c   :  { %v1760_v6 = vadd.f32 %v2252_v31, %v1759_v60  ;;  %v2290_v42 = vpop.f32.mrb[41].mxu1 }
 0x58d   :  { %v1762_v61 = vpop.f32.mrb[42].mxu1 }
 0x58e   :  { %v2291_v28 = vpop.f32.mrb[43].mxu1  ;;  %v2423_v37 = vpack.i.bf16 %v1760_v6, %v1714_v35 }
 0x590   :  { %2424 = vrot.lane.b32.xlu0 %v2423_v37, %s2653_s3 }
 0x593   :  { %v1851_v4 = vpop.f32.mrb[44].mxu1 }
 0x594   :  { %v1852_v9 = vadd.f32 %v2255_v23, %v1851_v4  ;;  %v2302_v46 = vpop.f32.mrb[45].mxu1 }
 0x595   :  { %v1854_v10 = vpop.f32.mrb[46].mxu1 }
 0x596   :  { %v2428_v54 = vpack.i.bf16 %v1852_v9, %v1806_v58  ;;  %v2303_v17 = vpop.f32.mrb[47].mxu1 }
 0x598   :  { %2429 = vrot.lane.b32.xlu1 %v2428_v54, %s2659_s4 }
 0x5fa   :  { %v2420_v32 = vpop.permute.xlu1 %2419 }
 0x5fb   :  { %v2422_v16 = vunpack.i.h.bf16 %v2420_v32  ;;  %v2421_v44 = vunpack.i.l.bf16 %v2420_v32 }
 0x5fd   :  { %v1882_v52 = vsel %vm717_vm1, %v1576_v38, %v2422_v16  ;;  %v1881_v59 = vsel %vm717_vm1, %v3225_v26, %v2421_v44 }
 0x602   :  { %v2425_v12 = vpop.permute.xlu0 %2424 }
 0x603   :  { %v2427_v36 = vunpack.i.h.bf16 %v2425_v12  ;;  %v2426_v7 = vunpack.i.l.bf16 %v2425_v12 }
 0x605   :  { %v1885_v22 = vsel %vm1883_vm0, %v1882_v52, %v2427_v36  ;;  %v1884_v31 = vsel %vm1883_vm0, %v1881_v59, %v2426_v7 }
 0x60a   :  { %v2430_v57 = vpop.permute.xlu1 %2429 }
 0x60b   :  { %v2432_v18 = vunpack.i.h.bf16 %v2430_v57  ;;  %v2431_v20 = vunpack.i.l.bf16 %v2430_v57 }
 0x60d   :  { %v1888_v50 = vsel %vm1886_vm2, %v1885_v22, %v2432_v18  ;;  %v1887_v23 = vsel %vm1886_vm2, %v1884_v31, %v2431_v20 }
 0x60e   :  { %v1889_v24 = vpack.c.bf16 %v1888_v50, %v1887_v23 }
 0x610   :  { %2321 = vmatmul.mubr.bf16.vlgmr.msra.gmra.mrb[32].mxu0 %v1889_v24 }
 0x6e3   :  { %v1995_v41 = vpop.f32.mrb[32].mxu0 }
 0x6e4   :  { %v1996_v27 = vadd.f32 %v2133_v25, %v1995_v41  ;;  %v2322_v45 = vpop.f32.mrb[33].mxu0 }
 0x6e5   :  { %v1998_v29 = vpop.f32.mrb[34].mxu0 }
 0x6e6   :  { %v1999_v19 = vadd.f32 %v2133_v25, %v1998_v29  ;;  %v2323_v30 = vpop.f32.mrb[35].mxu0  ;;  %v2002_v26 = vadd.f32 %v2525_v33, %v1996_v27 }
 0x6e8   :  { %v2003_v34 = vadd.f32 %v2526_v2, %v1999_v19  ;;  %2004 = vadd.xlane.f32.xlu0 %v2002_v26 }
 0x6ea   :  { %2006 = vadd.xlane.f32.xlu1 %v2003_v34 }
 0x775   :  { %v2005_v38 = vpop.xlane.xlu0 %2004 }
 0x776   :  { %v2009_v49 = vmul.f32 0.0078125, %v2005_v38 }
 0x777   :  { %v2007_v39 = vpop.xlane.xlu1 %2006 }
 0x778   :  { %v2011_v56 = vsub.f32 %v2002_v26, %v2009_v49  ;;  %v2010_v62 = vmul.f32 0.0078125, %v2007_v39 }
 0x77a   :  { %v2012_v1 = vsub.f32 %v2003_v34, %v2010_v62  ;;  %v2013_v11 = vmul.f32 %v2011_v56, %v2011_v56 }
 0x77c   :  { %2015 = vadd.xlane.f32.xlu0 %v2013_v11  ;;  %v2014_v35 = vmul.f32 %v2012_v1, %v2012_v1 }
 0x780   :  { %2017 = vadd.xlane.f32.xlu0 %v2014_v35 }
 0x809   :  { %v2016_v40 = vpop.xlane.xlu0 %2015 }
 0x80a   :  { %v2019_v43 = vmul.f32 0.0078125, %v2016_v40 }
 0x80c   :  { %v2021_v47 = vadd.f32 1e-12, %v2019_v43 }
 0x80d   :  { %v2018_v5 = vpop.xlane.xlu0 %2017 }
 0x80e   :  { %2521 = vrsqrt.f32 %v2021_v47  ;;  %v2020_v8 = vmul.f32 0.0078125, %v2018_v5 }
 0x810   :  { %v2022_v48 = vadd.f32 1e-12, %v2020_v8 }
 0x812   :  { %2523 = vrsqrt.f32 %v2022_v48 }
 0x818   :  { %v2522_v53 = vpop.eup %2521 }
 0x819   :  { %v2025_v55 = vmul.f32 %v2522_v53, %v2011_v56 }
 0x81b   :  { %v2034_v15 = vmul.f32 %v2142_v51, %v2025_v55 }
 0x81c   :  { %v2524_v14 = vpop.eup %2523 }
 0x81d   :  { %v2026_v58 = vmul.f32 %v2524_v14, %v2012_v1  ;;  %v2043_v3 = vadd.f32 %v2143_v63, %v2034_v15 }
 0x81f   :  { %v2035_v0 = vmul.f32 %v2142_v51, %v2026_v58  ;;  %2045 = vst [vmem:[#allocation10] sm:$0xff] %v2043_v3 }
 0x821   :  { %v2044_v60 = vadd.f32 %v2143_v63, %v2035_v0 }
 0x823   :  { %2046 = vst [vmem:[#allocation10 + $0x8] sm:$0xff] %v2044_v60 }
 0x824   :  { %2626 = shalt.err (!%p2623_p8)
}
 0x825   :  { %s2627_s3 = scalar_lea.hbm %s3271_s10, 256 }
 0x826   :  { %p2628_p9 = scmp.ne.s32.totalorder %s3271_s10, %s2627_s3  ;;  %p2631_p10 = scmp.lt.u32.totalorder %s2627_s3, %s3271_s10 }
 0x828   :  { %p2633_p11 = pnand %p2631_p10, %p2628_p9 }
 0x82a   :  { %2636 = shalt.err (!%p2633_p11)
}
 0x82b   :  { %2058 = dma.vmem_to_hbm [thread:$0]  %s2053_s22, 256, %s3271_s10, [#allocation4], %s2647_s25, %s2647_s25, %s2648_s26  }
 0x82c   :  { %2643 = dma.done.wait [#allocation4], 256  }
 0x82d   :  { %2644 = vsyncadd [#allocation4], 4294967040 }
 0x82e   :  { %2062 = vsyncpa [#allocation3], 1 }
 0x82f   :  { %2063 = vsyncpa [#allocation6], 1 }
 0x830   :  { %2064 = vsyncpa [#allocation9], 1 }
 0x831   :  { %2065 = vsyncpa [#allocation4], 1 }

</bundles_post_ra>
